<compile_context>
chip_gen: v7x
topology: tpu7x:2x2x1
jax: 0.10.0
libtpu: 0.0.40
codegen_flags: <defaults>
</compile_context>

<pallas_src>
import math

import numpy as np
import jax
import jax.numpy as jnp
from jax import lax
from jax.experimental import pallas as pl
from jax.experimental.pallas import tpu as pltpu

# ---------------------------------------------------------------------------
# model config (small, deterministic)
# ---------------------------------------------------------------------------
B = 2                      # batch
NV = 8                     # num video frames
NA = 8                     # num audio tokens
D = 32                     # d_model
H = 4                      # num heads
HD = D // H                # head dim
MLP_HIDDEN = int(D * 4.0)  # 128 (== wide-slab lane width)
EPS = 1e-6
NEG_INF = -1e30

NR = B * (NV + NA)         # 32 packed activation rows: vid rows then aud rows
NVR = B * NV               # 16 vid rows
SCALE = 1.0 / math.sqrt(HD)

# ---- wide slab layout (rows x 128 lanes), all f32 ----
W_QKV_OFF = 0                   # (2D, 128)  [Wq|Wk|Wv] row-stacked per modality, lane-padded
W_W1_OFF = W_QKV_OFF + 2 * D    # (2D, MLP_HIDDEN) [W1_av; W1_va]
W_B1_OFF = W_W1_OFF + 2 * D     # (NR, MLP_HIDDEN) row-group-broadcast hidden bias
WIDE_ROWS = W_B1_OFF + NR       # 160

# ---- narrow slab layout (rows x 32 lanes), all f32 ----
N_W2_OFF = 0                             # (2*MLP_HIDDEN, D) [W2_av; W2_va]
N_WO_OFF = N_W2_OFF + 2 * MLP_HIDDEN     # (2D, D)           [Wo_av; Wo_va]
N_GN1_OFF = N_WO_OFF + 2 * D             # LN1 gamma  (NR, D) row-group broadcast
N_BN1_OFF = N_GN1_OFF + NR               # LN1 beta
N_GN2_OFF = N_BN1_OFF + NR               # LN2 gamma
N_BN2_OFF = N_GN2_OFF + NR               # LN2 beta
N_BO_OFF = N_BN2_OFF + NR                # attn out-proj bias
N_B2_OFF = N_BO_OFF + NR                 # MLP out bias
N_MASK_OFF = N_B2_OFF + NR               # additive score mask (H*NR, NR)
N_HSEL_OFF = N_MASK_OFF + H * NR         # multiplicative head-lane selector (H*NR, D)
N_MV_OFF = N_HSEL_OFF + H * NR           # vid-row mask (NR, D)
N_MA_OFF = N_MV_OFF + NR                 # aud-row mask (NR, D)
NARROW_ROWS = N_MA_OFF + NR              # 832


# ---------------------------------------------------------------------------
# in-kernel helpers
# ---------------------------------------------------------------------------
def _dot(a, b):
    return jnp.dot(a, b, preferred_element_type=jnp.float32)


def _dot_t(a, b):
    # a @ b.T (contract last dims of both) without an explicit transpose value.
    return lax.dot_general(a, b, (((1,), (1,)), ((), ())),
                           preferred_element_type=jnp.float32)


def _layer_norm(x, g, b):
    mu = jnp.mean(x, axis=-1, keepdims=True)
    xc = x - mu
    var = jnp.mean(xc * xc, axis=-1, keepdims=True)
    return xc * lax.rsqrt(var + EPS) * g + b


def _gelu_exact(x):
    # matches torch.nn.GELU() (erf form)
    return 0.5 * x * (1.0 + lax.erf(x * (1.0 / math.sqrt(2.0))))


# ---------------------------------------------------------------------------
# Pallas kernel (single invocation, whole batch, both modalities fused)
# ---------------------------------------------------------------------------
def _bimodal_kernel(x_ref, wide_ref, nar_ref, out_ref):
    x = x_ref[...]                                              # (NR, D)

    # --- parameter / constant-mask views (all static, sublane-aligned slices) ---
    wqkv = wide_ref[W_QKV_OFF:W_QKV_OFF + 2 * D, :]             # (2D, 128) lanes 3D.. zero
    w1 = wide_ref[W_W1_OFF:W_W1_OFF + 2 * D, :]                 # (2D, MLP_HIDDEN)
    b1 = wide_ref[W_B1_OFF:W_B1_OFF + NR, :]                    # (NR, MLP_HIDDEN)

    w2 = nar_ref[N_W2_OFF:N_W2_OFF + 2 * MLP_HIDDEN, :]         # (2*MLP_HIDDEN, D)
    wo = nar_ref[N_WO_OFF:N_WO_OFF + 2 * D, :]                  # (2D, D)
    gn1 = nar_ref[N_GN1_OFF:N_GN1_OFF + NR, :]
    bn1 = nar_ref[N_BN1_OFF:N_BN1_OFF + NR, :]
    gn2 = nar_ref[N_GN2_OFF:N_GN2_OFF + NR, :]
    bn2 = nar_ref[N_BN2_OFF:N_BN2_OFF + NR, :]
    bo = nar_ref[N_BO_OFF:N_BO_OFF + NR, :]
    b2 = nar_ref[N_B2_OFF:N_B2_OFF + NR, :]
    mask = nar_ref[N_MASK_OFF:N_MASK_OFF + H * NR, :]           # (H*NR, NR) additive
    hsel = nar_ref[N_HSEL_OFF:N_HSEL_OFF + H * NR, :]           # (H*NR, D)  {0,1}
    mv = nar_ref[N_MV_OFF:N_MV_OFF + NR, :]                     # (NR, D) vid rows = 1
    ma = nar_ref[N_MA_OFF:N_MA_OFF + NR, :]                     # (NR, D) aud rows = 1

    # =========================== cross attention ===========================
    # pre-norm, then block-diagonal LHS so av & va projections run in one matmul.
    x_n = _layer_norm(x, gn1, bn1)
    x_bd = jnp.concatenate([x_n * mv, x_n * ma], axis=1)        # (NR, 2D) block-diag
    qkv = _dot(x_bd, wqkv)                                      # (NR, 128)
    q = qkv[:, 0:D]          # rows 0:16 av queries (vid), 16:32 va queries (aud); scale pre-folded
    k = qkv[:, D:2 * D]      # rows 0:16 keys for va (from vid), 16:32 keys for av (from aud)
    v = qkv[:, 2 * D:3 * D]

    # head-packed scores: queries replicated per head along sublanes, head lanes selected.
    qhat = jnp.concatenate([q, q, q, q], axis=0) * hsel         # (H*NR, D)
    s = _dot_t(qhat, k) + mask                                  # (H*NR, NR)
    s = s - jnp.max(s, axis=-1, keepdims=True)
    e = jnp.exp(s)
    p = e * pl.reciprocal(jnp.sum(e, axis=-1, keepdims=True), approx=True)
    c = _dot(p, v) * hsel                                       # (H*NR, D) per-head contexts
    attn = (c[0:NR] + c[NR:2 * NR] +
            c[2 * NR:3 * NR] + c[3 * NR:4 * NR])                # (NR, D) head concat

    attn_bd = jnp.concatenate([attn * mv, attn * ma], axis=1)   # (NR, 2D)
    x2 = x + _dot(attn_bd, wo) + bo                             # residual

    # ================================ MLP ==================================
    x2_n = _layer_norm(x2, gn2, bn2)
    x2_bd = jnp.concatenate([x2_n * mv, x2_n * ma], axis=1)     # (NR, 2D)
    hdn = _gelu_exact(_dot(x2_bd, w1) + b1)                     # (NR, MLP_HIDDEN)
    h_bd = jnp.concatenate([hdn * mv[:, 0:1], hdn * ma[:, 0:1]], axis=1)  # (NR, 2*MLP_HIDDEN)
    x3 = x2 + _dot(h_bd, w2) + b2                               # residual

    out_ref[...] = x3.astype(out_ref.dtype)                     # single full-tile store


# ---------------------------------------------------------------------------
# one-time parameter packing (call ONCE at init; NOT in the per-call path)
# ---------------------------------------------------------------------------
def pack_params(params):
    f32 = jnp.float32

    # ---- wide slab (WIDE_ROWS, 128) ----
    top = jnp.concatenate([params["wq_av"] * SCALE, params["wk_va"], params["wv_va"]], axis=1)
    bot = jnp.concatenate([params["wq_va"] * SCALE, params["wk_av"], params["wv_av"]], axis=1)
    wqkv = jnp.pad(jnp.concatenate([top, bot], axis=0),
                   ((0, 0), (0, MLP_HIDDEN - 3 * D)))                      # (2D, 128)
    w1f = jnp.concatenate([params["w1_av"], params["w1_va"]], axis=0)      # (2D, 128)
    b1f = jnp.concatenate([jnp.broadcast_to(params["b1_av"], (NVR, MLP_HIDDEN)),
                           jnp.broadcast_to(params["b1_va"], (NR - NVR, MLP_HIDDEN))],
                          axis=0)                                          # (NR, 128)
    wide = jnp.concatenate([wqkv, w1f, b1f], axis=0).astype(f32)

    # ---- narrow slab (NARROW_ROWS, 32) ----
    def row_groups(av, va):
        return jnp.concatenate([jnp.broadcast_to(av, (NVR, D)),
                                jnp.broadcast_to(va, (NR - NVR, D))], axis=0)

    w2f = jnp.concatenate([params["w2_av"], params["w2_va"]], axis=0)      # (256, D)
    wof = jnp.concatenate([params["wo_av"], params["wo_va"]], axis=0)      # (2D, D)
    gn1 = row_groups(params["g_av1"], params["g_va1"])
    bn1 = row_groups(params["b_av1"], params["b_va1"])
    gn2 = row_groups(params["g_av2"], params["g_va2"])
    bn2 = row_groups(params["b_av2"], params["b_va2"])
    bof = row_groups(params["bo_av"], params["bo_va"])
    b2f = row_groups(params["b2_av"], params["b2_va"])

    # constant masks (compile-time, numpy)
    qi = np.arange(NR)
    q_is_aud = qi >= NVR
    q_batch = np.where(q_is_aud, (qi - NVR) // NA, qi // NV)
    kj = np.arange(NR)
    k_is_aud = kj >= NVR
    k_batch = np.where(k_is_aud, (kj - NVR) // NA, kj // NV)
    valid = (q_is_aud[:, None] != k_is_aud[None, :]) & (q_batch[:, None] == k_batch[None, :])
    mask = np.tile(np.where(valid, 0.0, NEG_INF).astype(np.float32), (H, 1))   # (H*NR, NR)

    hsel = np.zeros((H, NR, D), np.float32)
    for h in range(H):
        hsel[h, :, h * HD:(h + 1) * HD] = 1.0
    hsel = hsel.reshape(H * NR, D)

    mv = np.zeros((NR, D), np.float32)
    mv[:NVR, :] = 1.0
    ma = (1.0 - mv).astype(np.float32)

    narrow = jnp.concatenate([w2f, wof, gn1, bn1, gn2, bn2, bof, b2f,
                              jnp.asarray(mask), jnp.asarray(hsel),
                              jnp.asarray(mv), jnp.asarray(ma)], axis=0).astype(f32)

    assert wide.shape == (WIDE_ROWS, MLP_HIDDEN)
    assert narrow.shape == (NARROW_ROWS, D)
    return wide, narrow


# ---------------------------------------------------------------------------
# per-call wrapper (no parameter packing inside)
# ---------------------------------------------------------------------------
@jax.jit
def bimodal_encoder_layer(vid, aud, wide, narrow):
    # one activation slab: vid rows then aud rows (batch folded into sublanes)
    x_in = jnp.concatenate([vid.reshape(NVR, D), aud.reshape(NR - NVR, D)], axis=0)

    out = pl.pallas_call(
        _bimodal_kernel,
        out_shape=jax.ShapeDtypeStruct((NR, D), vid.dtype),
        grid_spec=pltpu.PrefetchScalarGridSpec(
            num_scalar_prefetch=0,
            grid=(1,),                                            # single step, 3 input DMAs
            in_specs=[
                pl.BlockSpec((NR, D), lambda i: (0, 0)),                       # activations
                pl.BlockSpec((WIDE_ROWS, MLP_HIDDEN), lambda i: (0, 0)),       # wide params
                pl.BlockSpec((NARROW_ROWS, D), lambda i: (0, 0)),              # narrow params
            ],
            out_specs=pl.BlockSpec((NR, D), lambda i: (0, 0)),
        ),
        compiler_params=pltpu.CompilerParams(
            dimension_semantics=("arbitrary",),
        ),
    )(x_in, wide, narrow)

    vid_out = out[:NVR].reshape(B, NV, D)
    aud_out = out[NVR:].reshape(B, NA, D)
    return vid_out, aud_out


# ---------------------------------------------------------------------------
# pure-JAX reference (same math, no Pallas) for a sanity check
# ---------------------------------------------------------------------------
def _ref_layer_norm(x, g, b):
    mu = jnp.mean(x, -1, keepdims=True)
    xc = x - mu
    var = jnp.mean(xc * xc, -1, keepdims=True)
    return xc * lax.rsqrt(var + EPS) * g + b


def _ref_attn(xq, xkv, wq, wk, wv, wo, bo):
    q = xq @ wq
    k = xkv @ wk
    v = xkv @ wv
    Nq, Nk = xq.shape[1], xkv.shape[1]
    qh = q.reshape(-1, Nq, H, HD).transpose(0, 2, 1, 3)
    kh = k.reshape(-1, Nk, H, HD).transpose(0, 2, 1, 3)
    vh = v.reshape(-1, Nk, H, HD).transpose(0, 2, 1, 3)
    s = jnp.einsum("bhqd,bhkd->bhqk", qh, kh) / math.sqrt(HD)
    p = jax.nn.softmax(s, axis=-1)
    o = jnp.einsum("bhqk,bhkd->bhqd", p, vh).transpose(0, 2, 1, 3).reshape(-1, Nq, D)
    return o @ wo + bo


def _ref_mlp(x, w1, b1, w2, b2):
    h = x @ w1 + b1
    h = 0.5 * h * (1.0 + lax.erf(h / math.sqrt(2.0)))
    return h @ w2 + b2


def reference_forward(vid, aud, p):
    vid_n = _ref_layer_norm(vid, p["g_av1"], p["b_av1"])
    aud_n = _ref_layer_norm(aud, p["g_va1"], p["b_va1"])
    vid2 = vid + _ref_attn(vid_n, aud_n, p["wq_av"], p["wk_av"], p["wv_av"],
                           p["wo_av"], p["bo_av"])
    aud2 = aud + _ref_attn(aud_n, vid_n, p["wq_va"], p["wk_va"], p["wv_va"],
                           p["wo_va"], p["bo_va"])
    vid3 = vid2 + _ref_mlp(_ref_layer_norm(vid2, p["g_av2"], p["b_av2"]),
                           p["w1_av"], p["b1_av"], p["w2_av"], p["b2_av"])
    aud3 = aud2 + _ref_mlp(_ref_layer_norm(aud2, p["g_va2"], p["b_va2"]),
                           p["w1_va"], p["b1_va"], p["w2_va"], p["b2_va"])
    return vid3, aud3


# ---------------------------------------------------------------------------
# deterministic parameter init
# ---------------------------------------------------------------------------
def init_params(key):
    ks = iter(jax.random.split(key, 32))
    n = lambda shape, s=0.02: (s * jax.random.normal(next(ks), shape)).astype(jnp.float32)
    params = {}
    for tag in ("av", "va"):
        params[f"wq_{tag}"] = n((D, D))
        params[f"wk_{tag}"] = n((D, D))
        params[f"wv_{tag}"] = n((D, D))
        params[f"wo_{tag}"] = n((D, D))
        params[f"bo_{tag}"] = jnp.zeros((1, D), jnp.float32)
        params[f"w1_{tag}"] = n((D, MLP_HIDDEN))
        params[f"b1_{tag}"] = jnp.zeros((1, MLP_HIDDEN), jnp.float32)
        params[f"w2_{tag}"] = n((MLP_HIDDEN, D))
        params[f"b2_{tag}"] = jnp.zeros((1, D), jnp.float32)
    for ln in ("av1", "va1", "av2", "va2"):
        params[f"g_{ln}"] = jnp.ones((1, D), jnp.float32)
        params[f"b_{ln}"] = jnp.zeros((1, D), jnp.float32)
    return params


if __name__ == "__main__":
    key = jax.random.PRNGKey(0)
    k_vid, k_aud, k_par = jax.random.split(key, 3)
    vid = jax.random.normal(k_vid, (B, NV, D), jnp.float32)
    aud = jax.random.normal(k_aud, (B, NA, D), jnp.float32)
    params = init_params(k_par)

    # pack ONCE at init (hoisted out of the per-call path per perf review)
    wide_slab, narrow_slab = pack_params(params)
    wide_slab, narrow_slab = jax.block_until_ready((wide_slab, narrow_slab))

    vid_out, aud_out = bimodal_encoder_layer(vid, aud, wide_slab, narrow_slab)
    jax.block_until_ready((vid_out, aud_out))

    vid_ref, aud_ref = reference_forward(vid, aud, params)
    assert jnp.allclose(vid_out, vid_ref, atol=1e-4, rtol=1e-4)
    assert jnp.allclose(aud_out, aud_ref, atol=1e-4, rtol=1e-4)

    print("KERNEL_OK")
</pallas_src>

<mosaic_0001>
module attributes {stable_mosaic.version = 11 : i64} {
  func.func @_bimodal_kernel(%arg0: i32, %arg1: memref<32x32xf32, #tpu.memory_space<vmem>>, %arg2: memref<160x128xf32, #tpu.memory_space<vmem>>, %arg3: memref<832x32xf32, #tpu.memory_space<vmem>>, %arg4: memref<32x32xf32, #tpu.memory_space<vmem>>) attributes {dimension_semantics = [#tpu.dimension_semantics<arbitrary>], iteration_bounds = array<i64: 1>, scalar_prefetch = 0 : i64, scratch_operands = 0 : i64, tpu.core_type = #tpu.core_type<tc>, window_params = [{pipeline_mode = #tpu.pipeline_mode<synchronous>, transform_indices = @transform_0, window_bounds = array<i64: 32, 32>}, {pipeline_mode = #tpu.pipeline_mode<synchronous>, transform_indices = @transform_1, window_bounds = array<i64: 160, 128>}, {pipeline_mode = #tpu.pipeline_mode<synchronous>, transform_indices = @transform_2, window_bounds = array<i64: 832, 32>}, {pipeline_mode = #tpu.pipeline_mode<synchronous>, transform_indices = @transform_3, window_bounds = array<i64: 32, 32>}]} {
    %c0 = arith.constant 0 : index
    %c0_0 = arith.constant 0 : index
    %0 = vector.load %arg1[%c0, %c0_0] : memref<32x32xf32, #tpu.memory_space<vmem>>, vector<32x32xf32>
    %c0_1 = arith.constant 0 : index
    %c0_2 = arith.constant 0 : index
    %1 = vector.load %arg2[%c0_1, %c0_2] : memref<160x128xf32, #tpu.memory_space<vmem>>, vector<64x128xf32>
    %c64 = arith.constant 64 : index
    %c0_3 = arith.constant 0 : index
    %2 = vector.load %arg2[%c64, %c0_3] : memref<160x128xf32, #tpu.memory_space<vmem>>, vector<64x128xf32>
    %c128 = arith.constant 128 : index
    %c0_4 = arith.constant 0 : index
    %3 = vector.load %arg2[%c128, %c0_4] : memref<160x128xf32, #tpu.memory_space<vmem>>, vector<32x128xf32>
    %c0_5 = arith.constant 0 : index
    %c0_6 = arith.constant 0 : index
    %4 = vector.load %arg3[%c0_5, %c0_6] : memref<832x32xf32, #tpu.memory_space<vmem>>, vector<256x32xf32>
    %c256 = arith.constant 256 : index
    %c0_7 = arith.constant 0 : index
    %5 = vector.load %arg3[%c256, %c0_7] : memref<832x32xf32, #tpu.memory_space<vmem>>, vector<64x32xf32>
    %c320 = arith.constant 320 : index
    %c0_8 = arith.constant 0 : index
    %6 = vector.load %arg3[%c320, %c0_8] : memref<832x32xf32, #tpu.memory_space<vmem>>, vector<32x32xf32>
    %c352 = arith.constant 352 : index
    %c0_9 = arith.constant 0 : index
    %7 = vector.load %arg3[%c352, %c0_9] : memref<832x32xf32, #tpu.memory_space<vmem>>, vector<32x32xf32>
    %c384 = arith.constant 384 : index
    %c0_10 = arith.constant 0 : index
    %8 = vector.load %arg3[%c384, %c0_10] : memref<832x32xf32, #tpu.memory_space<vmem>>, vector<32x32xf32>
    %c416 = arith.constant 416 : index
    %c0_11 = arith.constant 0 : index
    %9 = vector.load %arg3[%c416, %c0_11] : memref<832x32xf32, #tpu.memory_space<vmem>>, vector<32x32xf32>
    %c448 = arith.constant 448 : index
    %c0_12 = arith.constant 0 : index
    %10 = vector.load %arg3[%c448, %c0_12] : memref<832x32xf32, #tpu.memory_space<vmem>>, vector<32x32xf32>
    %c480 = arith.constant 480 : index
    %c0_13 = arith.constant 0 : index
    %11 = vector.load %arg3[%c480, %c0_13] : memref<832x32xf32, #tpu.memory_space<vmem>>, vector<32x32xf32>
    %c512 = arith.constant 512 : index
    %c0_14 = arith.constant 0 : index
    %12 = vector.load %arg3[%c512, %c0_14] : memref<832x32xf32, #tpu.memory_space<vmem>>, vector<128x32xf32>
    %c640 = arith.constant 640 : index
    %c0_15 = arith.constant 0 : index
    %13 = vector.load %arg3[%c640, %c0_15] : memref<832x32xf32, #tpu.memory_space<vmem>>, vector<128x32xf32>
    %c768 = arith.constant 768 : index
    %c0_16 = arith.constant 0 : index
    %14 = vector.load %arg3[%c768, %c0_16] : memref<832x32xf32, #tpu.memory_space<vmem>>, vector<32x32xf32>
    %c800 = arith.constant 800 : index
    %c0_17 = arith.constant 0 : index
    %15 = vector.load %arg3[%c800, %c0_17] : memref<832x32xf32, #tpu.memory_space<vmem>>, vector<32x32xf32>
    %cst = arith.constant dense<0.000000e+00> : vector<32xf32>
    %16 = vector.multi_reduction <add>, %0, %cst [1] : vector<32x32xf32> to vector<32xf32>
    %17 = vector.shape_cast %16 : vector<32xf32> to vector<32x1xf32>
    %cst_18 = arith.constant 3.200000e+01 : f32
    %18 = vector.broadcast %cst_18 : f32 to vector<32x1xf32>
    %19 = arith.divf %17, %18 : vector<32x1xf32>
    %20 = vector.broadcast %19 : vector<32x1xf32> to vector<32x32xf32>
    %21 = arith.subf %0, %20 : vector<32x32xf32>
    %22 = arith.mulf %21, %21 : vector<32x32xf32>
    %cst_19 = arith.constant dense<0.000000e+00> : vector<32xf32>
    %23 = vector.multi_reduction <add>, %22, %cst_19 [1] : vector<32x32xf32> to vector<32xf32>
    %24 = vector.shape_cast %23 : vector<32xf32> to vector<32x1xf32>
    %cst_20 = arith.constant 3.200000e+01 : f32
    %25 = vector.broadcast %cst_20 : f32 to vector<32x1xf32>
    %26 = arith.divf %24, %25 : vector<32x1xf32>
    %cst_21 = arith.constant 9.99999997E-7 : f32
    %27 = vector.broadcast %cst_21 : f32 to vector<32x1xf32>
    %28 = arith.addf %26, %27 : vector<32x1xf32>
    %29 = math.rsqrt %28 : vector<32x1xf32>
    %30 = vector.broadcast %29 : vector<32x1xf32> to vector<32x32xf32>
    %31 = arith.mulf %21, %30 : vector<32x32xf32>
    %32 = arith.mulf %31, %6 : vector<32x32xf32>
    %33 = arith.addf %32, %7 : vector<32x32xf32>
    %34 = arith.mulf %33, %14 : vector<32x32xf32>
    %35 = arith.mulf %33, %15 : vector<32x32xf32>
    %36 = tpu.concatenate %34, %35 in 1 : vector<32x32xf32>, vector<32x32xf32> -> vector<32x64xf32>
    %cst_22 = arith.constant dense<0.000000e+00> : vector<32x128xf32>
    %37 = tpu.matmul %36, %1, %cst_22 {dimension_numbers = #tpu.dot_dimension_numbers<[1], [0], [0], [1], [0, 0, 1, 1], [], []>} : vector<32x64xf32>, vector<64x128xf32>, vector<32x128xf32> -> vector<32x128xf32>
    %38 = vector.extract_strided_slice %37 {offsets = [0, 0], sizes = [32, 32], strides = [1, 1]} : vector<32x128xf32> to vector<32x32xf32>
    %39 = vector.extract_strided_slice %37 {offsets = [0, 32], sizes = [32, 32], strides = [1, 1]} : vector<32x128xf32> to vector<32x32xf32>
    %40 = vector.extract_strided_slice %37 {offsets = [0, 64], sizes = [32, 32], strides = [1, 1]} : vector<32x128xf32> to vector<32x32xf32>
    %41 = tpu.concatenate %38, %38, %38, %38 in 0 : vector<32x32xf32>, vector<32x32xf32>, vector<32x32xf32>, vector<32x32xf32> -> vector<128x32xf32>
    %42 = arith.mulf %41, %13 : vector<128x32xf32>
    %cst_23 = arith.constant dense<0.000000e+00> : vector<128x32xf32>
    %43 = tpu.matmul %42, %39, %cst_23 {dimension_numbers = #tpu.dot_dimension_numbers<[1], [1], [0], [0], [0, 0, 1, 0], [], []>} : vector<128x32xf32>, vector<32x32xf32>, vector<128x32xf32> -> vector<128x32xf32>
    %44 = arith.addf %43, %12 : vector<128x32xf32>
    %cst_24 = arith.constant dense<0xFF800000> : vector<128xf32>
    %45 = vector.multi_reduction <maximumf>, %44, %cst_24 [1] : vector<128x32xf32> to vector<128xf32>
    %46 = vector.shape_cast %45 : vector<128xf32> to vector<128x1xf32>
    %47 = vector.broadcast %46 : vector<128x1xf32> to vector<128x32xf32>
    %48 = arith.subf %44, %47 : vector<128x32xf32>
    %49 = math.exp %48 : vector<128x32xf32>
    %cst_25 = arith.constant dense<0.000000e+00> : vector<128xf32>
    %50 = vector.multi_reduction <add>, %49, %cst_25 [1] : vector<128x32xf32> to vector<128xf32>
    %51 = vector.shape_cast %50 : vector<128xf32> to vector<128x1xf32>
    %52 = tpu.reciprocal %51 {approx = true} : vector<128x1xf32> -> vector<128x1xf32>
    %53 = vector.broadcast %52 : vector<128x1xf32> to vector<128x32xf32>
    %54 = arith.mulf %49, %53 : vector<128x32xf32>
    %cst_26 = arith.constant dense<0.000000e+00> : vector<128x32xf32>
    %55 = tpu.matmul %54, %40, %cst_26 {dimension_numbers = #tpu.dot_dimension_numbers<[1], [0], [0], [1], [0, 0, 1, 1], [], []>} : vector<128x32xf32>, vector<32x32xf32>, vector<128x32xf32> -> vector<128x32xf32>
    %56 = arith.mulf %55, %13 : vector<128x32xf32>
    %57 = vector.extract_strided_slice %56 {offsets = [0, 0], sizes = [32, 32], strides = [1, 1]} : vector<128x32xf32> to vector<32x32xf32>
    %58 = vector.extract_strided_slice %56 {offsets = [32, 0], sizes = [32, 32], strides = [1, 1]} : vector<128x32xf32> to vector<32x32xf32>
    %59 = arith.addf %57, %58 : vector<32x32xf32>
    %60 = vector.extract_strided_slice %56 {offsets = [64, 0], sizes = [32, 32], strides = [1, 1]} : vector<128x32xf32> to vector<32x32xf32>
    %61 = arith.addf %59, %60 : vector<32x32xf32>
    %62 = vector.extract_strided_slice %56 {offsets = [96, 0], sizes = [32, 32], strides = [1, 1]} : vector<128x32xf32> to vector<32x32xf32>
    %63 = arith.addf %61, %62 : vector<32x32xf32>
    %64 = arith.mulf %63, %14 : vector<32x32xf32>
    %65 = arith.mulf %63, %15 : vector<32x32xf32>
    %66 = tpu.concatenate %64, %65 in 1 : vector<32x32xf32>, vector<32x32xf32> -> vector<32x64xf32>
    %cst_27 = arith.constant dense<0.000000e+00> : vector<32x32xf32>
    %67 = tpu.matmul %66, %5, %cst_27 {dimension_numbers = #tpu.dot_dimension_numbers<[1], [0], [0], [1], [0, 0, 1, 1], [], []>} : vector<32x64xf32>, vector<64x32xf32>, vector<32x32xf32> -> vector<32x32xf32>
    %68 = arith.addf %0, %67 : vector<32x32xf32>
    %69 = arith.addf %68, %10 : vector<32x32xf32>
    %cst_28 = arith.constant dense<0.000000e+00> : vector<32xf32>
    %70 = vector.multi_reduction <add>, %69, %cst_28 [1] : vector<32x32xf32> to vector<32xf32>
    %71 = vector.shape_cast %70 : vector<32xf32> to vector<32x1xf32>
    %cst_29 = arith.constant 3.200000e+01 : f32
    %72 = vector.broadcast %cst_29 : f32 to vector<32x1xf32>
    %73 = arith.divf %71, %72 : vector<32x1xf32>
    %74 = vector.broadcast %73 : vector<32x1xf32> to vector<32x32xf32>
    %75 = arith.subf %69, %74 : vector<32x32xf32>
    %76 = arith.mulf %75, %75 : vector<32x32xf32>
    %cst_30 = arith.constant dense<0.000000e+00> : vector<32xf32>
    %77 = vector.multi_reduction <add>, %76, %cst_30 [1] : vector<32x32xf32> to vector<32xf32>
    %78 = vector.shape_cast %77 : vector<32xf32> to vector<32x1xf32>
    %cst_31 = arith.constant 3.200000e+01 : f32
    %79 = vector.broadcast %cst_31 : f32 to vector<32x1xf32>
    %80 = arith.divf %78, %79 : vector<32x1xf32>
    %cst_32 = arith.constant 9.99999997E-7 : f32
    %81 = vector.broadcast %cst_32 : f32 to vector<32x1xf32>
    %82 = arith.addf %80, %81 : vector<32x1xf32>
    %83 = math.rsqrt %82 : vector<32x1xf32>
    %84 = vector.broadcast %83 : vector<32x1xf32> to vector<32x32xf32>
    %85 = arith.mulf %75, %84 : vector<32x32xf32>
    %86 = arith.mulf %85, %8 : vector<32x32xf32>
    %87 = arith.addf %86, %9 : vector<32x32xf32>
    %88 = arith.mulf %87, %14 : vector<32x32xf32>
    %89 = arith.mulf %87, %15 : vector<32x32xf32>
    %90 = tpu.concatenate %88, %89 in 1 : vector<32x32xf32>, vector<32x32xf32> -> vector<32x64xf32>
    %cst_33 = arith.constant dense<0.000000e+00> : vector<32x128xf32>
    %91 = tpu.matmul %90, %2, %cst_33 {dimension_numbers = #tpu.dot_dimension_numbers<[1], [0], [0], [1], [0, 0, 1, 1], [], []>} : vector<32x64xf32>, vector<64x128xf32>, vector<32x128xf32> -> vector<32x128xf32>
    %92 = arith.addf %91, %3 : vector<32x128xf32>
    %cst_34 = arith.constant 5.000000e-01 : f32
    %93 = vector.broadcast %cst_34 : f32 to vector<32x128xf32>
    %94 = arith.mulf %93, %92 : vector<32x128xf32>
    %cst_35 = arith.constant 0.707106769 : f32
    %95 = vector.broadcast %cst_35 : f32 to vector<32x128xf32>
    %96 = arith.mulf %92, %95 : vector<32x128xf32>
    %97 = math.erf %96 : vector<32x128xf32>
    %cst_36 = arith.constant 1.000000e+00 : f32
    %98 = vector.broadcast %cst_36 : f32 to vector<32x128xf32>
    %99 = arith.addf %98, %97 : vector<32x128xf32>
    %100 = arith.mulf %94, %99 : vector<32x128xf32>
    %101 = vector.extract_strided_slice %14 {offsets = [0, 0], sizes = [32, 1], strides = [1, 1]} : vector<32x32xf32> to vector<32x1xf32>
    %102 = vector.broadcast %101 : vector<32x1xf32> to vector<32x128xf32>
    %103 = arith.mulf %100, %102 : vector<32x128xf32>
    %104 = vector.extract_strided_slice %15 {offsets = [0, 0], sizes = [32, 1], strides = [1, 1]} : vector<32x32xf32> to vector<32x1xf32>
    %105 = vector.broadcast %104 : vector<32x1xf32> to vector<32x128xf32>
    %106 = arith.mulf %100, %105 : vector<32x128xf32>
    %107 = tpu.concatenate %103, %106 in 1 : vector<32x128xf32>, vector<32x128xf32> -> vector<32x256xf32>
    %cst_37 = arith.constant dense<0.000000e+00> : vector<32x32xf32>
    %108 = tpu.matmul %107, %4, %cst_37 {dimension_numbers = #tpu.dot_dimension_numbers<[1], [0], [0], [1], [0, 0, 1, 1], [], []>} : vector<32x256xf32>, vector<256x32xf32>, vector<32x32xf32> -> vector<32x32xf32>
    %109 = arith.addf %69, %108 : vector<32x32xf32>
    %110 = arith.addf %109, %11 : vector<32x32xf32>
    %c0_38 = arith.constant 0 : index
    %c0_39 = arith.constant 0 : index
    %111 = vector.load %arg4[%c0_38, %c0_39] : memref<32x32xf32, #tpu.memory_space<vmem>>, vector<32x32xf32>
    tpu.vector_store %arg4[%c0_38, %c0_39], %110 {strides = array<i32>} : memref<32x32xf32, #tpu.memory_space<vmem>>, vector<32x32xf32>,
    return
  }
  func.func @transform_0(%arg0: i32) -> (i32, i32) {
    %c0_i32 = arith.constant 0 : i32
    %c0_i32_0 = arith.constant 0 : i32
    %c0_i32_1 = arith.constant 0 : i32
    return %c0_i32, %c0_i32_0 : i32, i32
  }
  func.func @transform_1(%arg0: i32) -> (i32, i32) {
    %c0_i32 = arith.constant 0 : i32
    %c0_i32_0 = arith.constant 0 : i32
    %c0_i32_1 = arith.constant 0 : i32
    return %c0_i32, %c0_i32_0 : i32, i32
  }
  func.func @transform_2(%arg0: i32) -> (i32, i32) {
    %c0_i32 = arith.constant 0 : i32
    %c0_i32_0 = arith.constant 0 : i32
    %c0_i32_1 = arith.constant 0 : i32
    return %c0_i32, %c0_i32_0 : i32, i32
  }
  func.func @transform_3(%arg0: i32) -> (i32, i32) {
    %c0_i32 = arith.constant 0 : i32
    %c0_i32_0 = arith.constant 0 : i32
    %c0_i32_1 = arith.constant 0 : i32
    return %c0_i32, %c0_i32_0 : i32, i32
  }
}

</mosaic_0001>

<bundles_post_ra>
// kernel: bimodal_encoder_layer.1
= control target key start
LH: loop header
LB: loop body
LE: loop exit
PB: predicated region body
PF: predicated region fallthrough
CT: control target
= control target key end

     0   :  { %vm142_vm0 = vcmask 261120   ;;  %s1979_s27 = smov 32   ;;  %vm232_vm1 = vcmask 523264   ;;  %s1980_s17 = smov 96   ;;  %s2829_s0 = inlined_call_operand.vmem [shape: f32[32,32], index: 0, kind: input, shape index: {}]   ;;  %s2830_s1 = inlined_call_operand.vmem [shape: f32[160,128], index: 1, kind: input, shape index: {}]   ;;  %s2831_s2 = inlined_call_operand.vmem [shape: f32[832,32], index: 2, kind: input, shape index: {}]   ;;  %s2832_s3 = inlined_call_operand.vmem [shape: f32[32,32], index: 3, kind: output, shape index: {}]  }
   0x1   :  { %v14_v0 = vld [vmem:[%s2829_s0] sm:$0xff]  ;;  %v16_v1 = vld [vmem:[%s2829_s0 + $0x10] sm:$0xff]  ;;  %v15_v2 = vld [vmem:[%s2829_s0 + $0x8] sm:$0xff]  ;;  %s1981_s29 = smov 64  }
   0x2   :  { %v143_v3 = vsel %vm142_vm0, %v14_v0, 0.0  ;;  %v149_v4 = vsel %vm142_vm0, %v16_v1, 0.0  ;;  %v17_v5 = vld [vmem:[%s2829_s0 + $0x18] sm:$0xff]  ;;  %v146_v6 = vsel %vm142_vm0, %v15_v2, 0.0  ;;  %v18_v28 = vld [vmem:[%s2830_s1] sm:$0xff]  ;;  %v19_v29 = vld [vmem:[%s2830_s1 + $0x8] sm:$0xff] }
   0x3   :  { %144 = vadd.xlane.f32.xlu0 %v143_v3  ;;  %150 = vadd.xlane.f32.xlu1 %v149_v4  ;;  %v152_v7 = vsel %vm142_vm0, %v17_v5, 0.0  ;;  %v20_v30 = vld [vmem:[%s2830_s1 + $0x10] sm:$0xff]  ;;  %v1753_v31 = vpack.c.bf16 %v19_v29, %v18_v28  ;;  %v21_v32 = vld [vmem:[%s2830_s1 + $0x18] sm:$0xff]  ;;  %v22_v34 = vld [vmem:[%s2830_s1 + $0x20] sm:$0xff] }
   0x4   :  { %v1757_v33 = vpack.c.bf16 %v21_v32, %v20_v30  ;;  %v23_v35 = vld [vmem:[%s2830_s1 + $0x28] sm:$0xff]  ;;  %v24_v48 = vld [vmem:[%s2830_s1 + $0x30] sm:$0xff]  ;;  %v25_v49 = vld [vmem:[%s2830_s1 + $0x38] sm:$0xff] }
   0x5   :  { %1754 = vmatprep.subr.bf16.mxu0 %v1753_v31  ;;  %v1761_v36 = vpack.c.bf16 %v23_v35, %v22_v34  ;;  %v1765_v51 = vpack.c.bf16 %v25_v49, %v24_v48  ;;  %v78_v53 = vld [vmem:[%s2831_s2 + $0x140] sm:$0xff]  ;;  %v79_v59 = vld [vmem:[%s2831_s2 + $0x148] sm:$0xff]  ;;  %v80_v63 = vld [vmem:[%s2831_s2 + $0x150] sm:$0xff] }
   0x6   :  { %1756 = vmatpush3.bf16.msra.mxu0 %v1753_v31  ;;  %v82_v55 = vld [vmem:[%s2831_s2 + $0x160] sm:$0xff]  ;;  %v2134_v31 = vld [vmem:[%s2831_s2 + $0x318] sm:$0xff]  ;;  %vm1770_vm2 = vmpackc.low %vm142_vm0, %vm142_vm0 }
   0x7   :  { %147 = vadd.xlane.f32.xlu0 %v146_v6  ;;  %153 = vadd.xlane.f32.xlu1 %v152_v7  ;;  %v2064_v58 = vld [vmem:[%s2831_s2 + $0x320] sm:$0xff]  ;;  %v84_v6 = vld [vmem:[%s2831_s2 + $0x170] sm:$0xff] }
   0x8   :  { %1758 = vmatprep.subr.bf16.mxu0 %v1757_v33 }
   0xa   :  { %1760 = vmatpush3.bf16.msra.mxu0 %v1757_v33 }
   0xb   :  { %1762 = vmatprep.subr.bf16.mxu0 %v1761_v36 }
   0xe   :  { %1764 = vmatpush3.bf16.msra.mxu0 %v1761_v36  ;;  %v2144_v36 = vld [vmem:[%s2831_s2 + $0x280] sm:$0xff] }
   0xf   :  { %1766 = vmatprep.subr.bf16.mxu0 %v1765_v51 }
  0x12   :  { %1768 = vmatpush3.bf16.msra.mxu0 %v1765_v51 }
  0x90   :  { %v145_v8 = vpop.xlane.xlu0 %144  ;;  %v151_v9 = vpop.xlane.xlu1 %150 }
  0x91   :  { %v156_v10 = vmul.f32 0.03125, %v145_v8  ;;  %v158_v11 = vmul.f32 0.03125, %v151_v9  ;;  %v81_v8 = vld [vmem:[%s2831_s2 + $0x158] sm:$0xff] }
  0x93   :  { %v160_v12 = vsub.f32 %v14_v0, %v156_v10  ;;  %v2019_v13 = vsub.f32 %v16_v1, %v158_v11  ;;  %v83_v0 = vld [vmem:[%s2831_s2 + $0x168] sm:$0xff] }
  0x94   :  { %v148_v14 = vpop.xlane.xlu0 %147  ;;  %v154_v15 = vpop.xlane.xlu1 %153 }
  0x95   :  { %v157_v16 = vmul.f32 0.03125, %v148_v14  ;;  %v159_v17 = vmul.f32 0.03125, %v154_v15  ;;  %v164_v18 = vmul.f32 %v160_v12, %v160_v12  ;;  %v166_v19 = vmul.f32 %v2019_v13, %v2019_v13  ;;  %v2094_v14 = vld [vmem:[%s2831_s2 + $0x330] sm:$0xff]  ;;  %v85_v15 = vld [vmem:[%s2831_s2 + $0x178] sm:$0xff] }
  0x97   :  { %v161_v20 = vsub.f32 %v15_v2, %v157_v16  ;;  %v2023_v21 = vsub.f32 %v17_v5, %v159_v17  ;;  %v168_v22 = vsel %vm142_vm0, %v164_v18, 0.0  ;;  %v174_v23 = vsel %vm142_vm0, %v166_v19, 0.0  ;;  %v2080_v5 = vld [vmem:[%s2831_s2 + $0x328] sm:$0xff]  ;;  %v2104_v18 = vld [vmem:[%s2831_s2 + $0x338] sm:$0xff] }
  0x98   :  { %169 = vadd.xlane.f32.xlu0 %v168_v22 }
  0x99   :  { %v165_v24 = vmul.f32 %v161_v20, %v161_v20  ;;  %v167_v25 = vmul.f32 %v2023_v21, %v2023_v21 }
  0x9b   :  { %v171_v26 = vsel %vm142_vm0, %v165_v24, 0.0  ;;  %v177_v27 = vsel %vm142_vm0, %v167_v25, 0.0 }
  0x9c   :  { %175 = vadd.xlane.f32.xlu0 %v174_v23  ;;  %172 = vadd.xlane.f32.xlu1 %v171_v26  ;;  %v2118_v23 = vld [vmem:[%s2831_s2 + $0x308] sm:$0xff] }
  0xa0   :  { %178 = vadd.xlane.f32.xlu1 %v177_v27  ;;  %v2126_v27 = vld [vmem:[%s2831_s2 + $0x310] sm:$0xff] }
 0x125   :  { %v170_v37 = vpop.xlane.xlu0 %169 }
 0x126   :  { %v180_v38 = vmul.f32 0.03125, %v170_v37 }
 0x128   :  { %v184_v39 = vadd.f32 1e-06, %v180_v38 }
 0x129   :  { %v173_v40 = vpop.xlane.xlu1 %172  ;;  %v176_v41 = vpop.xlane.xlu0 %175 }
 0x12a   :  { %1879 = vrsqrt.f32 %v184_v39  ;;  %v181_v42 = vmul.f32 0.03125, %v173_v40  ;;  %v182_v43 = vmul.f32 0.03125, %v176_v41 }
 0x12c   :  { %v185_v44 = vadd.f32 1e-06, %v181_v42  ;;  %v186_v45 = vadd.f32 1e-06, %v182_v43 }
 0x12d   :  { %v179_v46 = vpop.xlane.xlu1 %178 }
 0x12e   :  { %1881 = vrsqrt.f32 %v185_v44  ;;  %v183_v47 = vmul.f32 0.03125, %v179_v46 }
 0x12f   :  { %1883 = vrsqrt.f32 %v186_v45 }
 0x130   :  { %v187_v50 = vadd.f32 1e-06, %v183_v47 }
 0x132   :  { %1885 = vrsqrt.f32 %v187_v50 }
 0x134   :  { %v1880_v52 = vpop.eup %1879 }
 0x135   :  { %v192_v54 = vmul.f32 %v1880_v52, %v160_v12  ;;  %v2159_v52 = vld [vmem:[%s2831_s2 + $0x288] sm:$0xff] }
 0x137   :  { %v196_v56 = vmul.f32 %v192_v54, %v78_v53  ;;  %v2164_v53 = vld [vmem:[%s2831_s2 + $0x290] sm:$0xff] }
 0x138   :  { %v1882_v57 = vpop.eup %1881 }
 0x139   :  { %v1884_v60 = vpop.eup %1883  ;;  %v200_v61 = vadd.f32 %v196_v56, %v82_v55  ;;  %v193_v62 = vmul.f32 %v1882_v57, %v161_v20  ;;  %v2112_v20 = vld [vmem:[%s2831_s2 + $0x300] sm:$0xff]  ;;  %v2171_v56 = vld [vmem:[%s2831_s2 + $0x298] sm:$0xff] }
 0x13a   :  { %v194_v1 = vmul.f32 %v1884_v60, %v2019_v13  ;;  %v2177_v57 = vld [vmem:[%s2831_s2 + $0x2a0] sm:$0xff] }
 0x13b   :  { %v208_v2 = vmul.f32 %v200_v61, %v2064_v58  ;;  %v197_v3 = vmul.f32 %v193_v62, %v79_v59  ;;  %v2191_v62 = vld [vmem:[%s2831_s2 + $0x2b0] sm:$0xff] }
 0x13c   :  { %v1886_v4 = vpop.eup %1885  ;;  %v198_v7 = vmul.f32 %v194_v1, %v80_v63  ;;  %v2199_v1 = vld [vmem:[%s2831_s2 + $0x2b8] sm:$0xff] }
 0x13d   :  { %216 = vrot.lane.b32.xlu0 %v208_v2, %s1979_s27  ;;  %v201_v9 = vadd.f32 %v197_v3, %v83_v0  ;;  %v195_v10 = vmul.f32 %v1886_v4, %v2023_v21  ;;  %v204_v21 = vmul.f32 %v200_v61, %v2112_v20  ;;  %v2185_v61 = vld [vmem:[%s2831_s2 + $0x2a8] sm:$0xff]  ;;  %v2205_v2 = vld [vmem:[%s2831_s2 + $0x2c0] sm:$0xff] }
 0x13e   :  { %v202_v12 = vadd.f32 %v198_v7, %v84_v6  ;;  %v2213_v6 = vld [vmem:[%s2831_s2 + $0x2c8] sm:$0xff]  ;;  %v2219_v7 = vld [vmem:[%s2831_s2 + $0x2d0] sm:$0xff] }
 0x13f   :  { %v209_v11 = vmul.f32 %v201_v9, %v2080_v5  ;;  %v199_v13 = vmul.f32 %v195_v10, %v81_v8  ;;  %v205_v25 = vmul.f32 %v201_v9, %v2118_v23  ;;  %v2227_v10 = vld [vmem:[%s2831_s2 + $0x2d8] sm:$0xff] }
 0x140   :  { %v210_v16 = vmul.f32 %v202_v12, %v2094_v14  ;;  %v206_v29 = vmul.f32 %v202_v12, %v2126_v27 }
 0x141   :  { %218 = vrot.lane.b32.xlu1 %v209_v11, %s1979_s27  ;;  %v203_v17 = vadd.f32 %v199_v13, %v85_v15  ;;  %v2233_v11 = vld [vmem:[%s2831_s2 + $0x2e0] sm:$0xff]  ;;  %v2241_v15 = vld [vmem:[%s2831_s2 + $0x2e8] sm:$0xff] }
 0x143   :  { %v211_v19 = vmul.f32 %v203_v17, %v2104_v18  ;;  %v207_v33 = vmul.f32 %v203_v17, %v2134_v31 }
 0x145   :  { %220 = vrot.lane.b32.xlu1 %v210_v16, %s1979_s27  ;;  %v2247_v16 = vld [vmem:[%s2831_s2 + $0x2f0] sm:$0xff] }
 0x149   :  { %222 = vrot.lane.b32.xlu1 %v211_v19, %s1979_s27 }
 0x1af   :  { %v217_v22 = vpop.permute.xlu0 %216 }
 0x1b0   :  { %v228_v24 = vsel %vm142_vm0, %v204_v21, %v217_v22  ;;  %v2255_v21 = vld [vmem:[%s2831_s2 + $0x2f8] sm:$0xff] }
 0x1b1   :  { %1639 = vmatprep.mubr.msk.f32.mxu0 %vm232_vm1, %v228_v24  ;;  %v103_v24 = vld [vmem:[%s2831_s2 + $0x208] sm:$0xff] }
 0x1b3   :  { %v219_v26 = vpop.permute.xlu1 %218 }
 0x1b4   :  { %v229_v28 = vsel %vm142_vm0, %v205_v25, %v219_v26  ;;  %v102_v25 = vld [vmem:[%s2831_s2 + $0x200] sm:$0xff] }
 0x1b5   :  { %1640 = vmatmul.mubr.msk.f32.vlgmr.msra.gmra.mrb[0].mxu0 %vm232_vm1, %v229_v28 }
 0x1b7   :  { %v221_v30 = vpop.permute.xlu1 %220 }
 0x1b8   :  { %v230_v32 = vsel %vm142_vm0, %v206_v29, %v221_v30 }
 0x1b9   :  { %1642 = vmatprep.mubr.msk.f32.mxu0 %vm232_vm1, %v230_v32  ;;  %v105_v32 = vld [vmem:[%s2831_s2 + $0x218] sm:$0xff] }
 0x1bb   :  { %v223_v34 = vpop.permute.xlu1 %222 }
 0x1bc   :  { %v231_v35 = vsel %vm142_vm0, %v207_v33, %v223_v34 }
 0x1bd   :  { %1643 = vmatmul.mubr.msk.f32.gmra.mrb[2].mxu0 %vm232_vm1, %v231_v35 }
 0x288   :  { %v1641_v37 = vpop.f32.mrb[0].mxu0 }
 0x289   :  { %v311_v38 = vpop.f32.mrb[1].mxu0  ;;  %v331_v54 = vmul.f32 %v1641_v37, %v2159_v52  ;;  %v335_v63 = vmul.f32 %v1641_v37, %v2185_v61  ;;  %v339_v8 = vmul.f32 %v1641_v37, %v2213_v6  ;;  %v343_v17 = vmul.f32 %v1641_v37, %v2241_v15 }
 0x28a   :  { %v2146_v39 = vpack.i.bf16 %v1641_v37, %v311_v38  ;;  %v330_v40 = vmul.f32 %v311_v38, %v2144_v36  ;;  %v334_v60 = vmul.f32 %v311_v38, %v2177_v57  ;;  %v338_v4 = vmul.f32 %v311_v38, %v2205_v2 }
 0x28b   :  { %v342_v13 = vmul.f32 %v311_v38, %v2233_v11 }
 0x28c   :  { %1858 = vrot.lane.b32.xlu0 %v2146_v39, %s1980_s17  ;;  %1653 = vmatprep.mubr.msk.f32.mxu1 %vm142_vm0, %v330_v40  ;;  %v104_v40 = vld [vmem:[%s2831_s2 + $0x210] sm:$0xff] }
 0x290   :  { %v1644_v41 = vpop.f32.mrb[2].mxu0 }
 0x291   :  { %v321_v42 = vpop.f32.mrb[3].mxu0  ;;  %v333_v59 = vmul.f32 %v1644_v41, %v2171_v56  ;;  %v337_v3 = vmul.f32 %v1644_v41, %v2199_v1  ;;  %v341_v12 = vmul.f32 %v1644_v41, %v2227_v10  ;;  %v345_v22 = vmul.f32 %v1644_v41, %v2255_v21 }
 0x292   :  { %v2151_v43 = vpack.i.bf16 %v1644_v41, %v321_v42  ;;  %v332_v55 = vmul.f32 %v321_v42, %v2164_v53  ;;  %v336_v0 = vmul.f32 %v321_v42, %v2191_v62  ;;  %v340_v9 = vmul.f32 %v321_v42, %v2219_v7  ;;  %v107_v41 = vld [vmem:[%s2831_s2 + $0x228] sm:$0xff] }
 0x293   :  { %v344_v19 = vmul.f32 %v321_v42, %v2247_v16 }
 0x294   :  { %1863 = vrot.lane.b32.xlu1 %v2151_v43, %s1980_s17 }
 0x2fe   :  { %v1859_v44 = vpop.permute.xlu0 %1858 }
 0x2ff   :  { %v1861_v45 = vunpack.i.h.bf16 %v1859_v44  ;;  %v1860_v46 = vunpack.i.l.bf16 %v1859_v44 }
 0x301   :  { %v1769_v47 = vpack.c.bf16 %v1861_v45, %v1860_v46 }
 0x303   :  { %1771 = vmatprep.subr.msk.bf16.mxu1 %vm1770_vm2, %v1769_v47 }
 0x304   :  { %1774 = vmatpush3.bf16.xpose.msk.msra.mxu1 %vm1770_vm2, %v1769_v47 }
 0x306   :  { %v1864_v48 = vpop.permute.xlu1 %1863 }
 0x307   :  { %v1866_v49 = vunpack.i.h.bf16 %v1864_v48  ;;  %v1865_v50 = vunpack.i.l.bf16 %v1864_v48  ;;  %v106_v48 = vld [vmem:[%s2831_s2 + $0x220] sm:$0xff] }
 0x309   :  { %v1775_v51 = vpack.c.bf16 %v1866_v49, %v1865_v50  ;;  %v109_v49 = vld [vmem:[%s2831_s2 + $0x238] sm:$0xff] }
 0x30b   :  { %1777 = vmatprep.subr.msk.bf16.mxu1 %vm1770_vm2, %v1775_v51 }
 0x30c   :  { %1780 = vmatpush3.bf16.xpose.msk.msra.mxu1 %vm1770_vm2, %v1775_v51 }
 0x313   :  { %1654 = vmatmul.mubr.msk.f32.vlgmr.msra.gmra.mrb[0].mxu1 %vm142_vm0, %v331_v54 }
 0x314   :  { %1656 = vmatprep.mubr.msk.f32.mxu1 %vm142_vm0, %v332_v55 }
 0x317   :  { %1657 = vmatmul.mubr.msk.f32.gmra.mrb[2].mxu1 %vm142_vm0, %v333_v59 }
 0x318   :  { %1659 = vmatprep.mubr.msk.f32.mxu1 %vm142_vm0, %v334_v60 }
 0x31b   :  { %1660 = vmatmul.mubr.msk.f32.gmra.mrb[4].mxu1 %vm142_vm0, %v335_v63  ;;  %v108_v63 = vld [vmem:[%s2831_s2 + $0x230] sm:$0xff] }
 0x31c   :  { %1662 = vmatprep.mubr.msk.f32.mxu1 %vm142_vm0, %v336_v0  ;;  %v111_v0 = vld [vmem:[%s2831_s2 + $0x248] sm:$0xff] }
 0x31f   :  { %1663 = vmatmul.mubr.msk.f32.gmra.mrb[6].mxu1 %vm142_vm0, %v337_v3 }
 0x320   :  { %1665 = vmatprep.mubr.msk.f32.mxu1 %vm142_vm0, %v338_v4 }
 0x323   :  { %1666 = vmatmul.mubr.msk.f32.gmra.mrb[8].mxu1 %vm142_vm0, %v339_v8 }
 0x324   :  { %1668 = vmatprep.mubr.msk.f32.mxu1 %vm142_vm0, %v340_v9 }
 0x327   :  { %1669 = vmatmul.mubr.msk.f32.gmra.mrb[10].mxu1 %vm142_vm0, %v341_v12 }
 0x328   :  { %1671 = vmatprep.mubr.msk.f32.mxu1 %vm142_vm0, %v342_v13 }
 0x32b   :  { %1672 = vmatmul.mubr.msk.f32.gmra.mrb[12].mxu1 %vm142_vm0, %v343_v17  ;;  %v110_v17 = vld [vmem:[%s2831_s2 + $0x240] sm:$0xff] }
 0x32c   :  { %1674 = vmatprep.mubr.msk.f32.mxu1 %vm142_vm0, %v344_v19  ;;  %v113_v19 = vld [vmem:[%s2831_s2 + $0x258] sm:$0xff] }
 0x32f   :  { %1675 = vmatmul.mubr.msk.f32.gmra.mrb[14].mxu1 %vm142_vm0, %v345_v22 }
 0x3e6   :  { %v1655_v26 = vpop.f32.mrb[0].mxu1 }
 0x3e7   :  { %v2267_v28 = vadd.f32 %v1655_v26, %v103_v24  ;;  %v480_v29 = vpop.f32.mrb[1].mxu1 }
 0x3e8   :  { %v2269_v30 = vadd.f32 %v480_v29, %v102_v25 }
 0x3e9   :  { %v562_v33 = vsel %vm142_vm0, %v2267_v28, -inf }
 0x3ea   :  { %563 = vmax.xlane.f32.xlu1 %v562_v33  ;;  %v1658_v34 = vpop.f32.mrb[2].mxu1  ;;  %v559_v35 = vsel %vm142_vm0, %v2269_v30, -inf  ;;  %v112_v33 = vld [vmem:[%s2831_s2 + $0x250] sm:$0xff] }
 0x3eb   :  { %v2278_v37 = vadd.f32 %v1658_v34, %v105_v32  ;;  %560 = vmax.xlane.f32.xlu0 %v559_v35  ;;  %v490_v38 = vpop.f32.mrb[3].mxu1  ;;  %v115_v34 = vld [vmem:[%s2831_s2 + $0x268] sm:$0xff] }
 0x3ec   :  { %v2288_v44 = vadd.f32 %v490_v38, %v104_v40 }
 0x3ed   :  { %v568_v42 = vsel %vm142_vm0, %v2278_v37, -inf }
 0x3ee   :  { %v1661_v45 = vpop.f32.mrb[4].mxu1  ;;  %v565_v55 = vsel %vm142_vm0, %v2288_v44, -inf }
 0x3ef   :  { %v2290_v46 = vadd.f32 %v1661_v45, %v107_v41  ;;  %569 = vmax.xlane.f32.xlu0 %v568_v42  ;;  %v500_v47 = vpop.f32.mrb[5].mxu1 }
 0x3f0   :  { %v2300_v51 = vadd.f32 %v500_v47, %v106_v48  ;;  %v114_v47 = vld [vmem:[%s2831_s2 + $0x260] sm:$0xff]  ;;  %v117_v48 = vld [vmem:[%s2831_s2 + $0x278] sm:$0xff] }
 0x3f1   :  { %v574_v50 = vsel %vm142_vm0, %v2290_v46, -inf }
 0x3f2   :  { %575 = vmax.xlane.f32.xlu1 %v574_v50  ;;  %v1664_v54 = vpop.f32.mrb[6].mxu1  ;;  %v571_v9 = vsel %vm142_vm0, %v2300_v51, -inf }
 0x3f3   :  { %v2304_v59 = vadd.f32 %v1664_v54, %v109_v49  ;;  %v510_v60 = vpop.f32.mrb[7].mxu1  ;;  %566 = vmax.xlane.f32.xlu0 %v565_v55 }
 0x3f4   :  { %v2314_v4 = vadd.f32 %v510_v60, %v108_v63 }
 0x3f5   :  { %v580_v3 = vsel %vm142_vm0, %v2304_v59, -inf }
 0x3f6   :  { %581 = vmax.xlane.f32.xlu1 %v580_v3  ;;  %v1667_v8 = vpop.f32.mrb[8].mxu1  ;;  %v577_v26 = vsel %vm142_vm0, %v2314_v4, -inf }
 0x3f7   :  { %v2318_v12 = vadd.f32 %v1667_v8, %v111_v0  ;;  %v520_v13 = vpop.f32.mrb[9].mxu1  ;;  %572 = vmax.xlane.f32.xlu0 %v571_v9  ;;  %v116_v0 = vld [vmem:[%s2831_s2 + $0x270] sm:$0xff] }
 0x3f8   :  { %v2328_v24 = vadd.f32 %v520_v13, %v110_v17 }
 0x3f9   :  { %v586_v22 = vsel %vm142_vm0, %v2318_v12, -inf }
 0x3fa   :  { %587 = vmax.xlane.f32.xlu1 %v586_v22  ;;  %v1670_v25 = vpop.f32.mrb[10].mxu1  ;;  %v583_v41 = vsel %vm142_vm0, %v2328_v24, -inf }
 0x3fb   :  { %v2332_v29 = vadd.f32 %v1670_v25, %v113_v19  ;;  %v530_v32 = vpop.f32.mrb[11].mxu1  ;;  %578 = vmax.xlane.f32.xlu0 %v577_v26 }
 0x3fc   :  { %v2342_v38 = vadd.f32 %v530_v32, %v112_v33 }
 0x3fd   :  { %v592_v35 = vsel %vm142_vm0, %v2332_v29, -inf }
 0x3fe   :  { %593 = vmax.xlane.f32.xlu1 %v592_v35  ;;  %v1673_v40 = vpop.f32.mrb[12].mxu1  ;;  %v589_v55 = vsel %vm142_vm0, %v2342_v38, -inf }
 0x3ff   :  { %v2346_v42 = vadd.f32 %v1673_v40, %v115_v34  ;;  %v540_v45 = vpop.f32.mrb[13].mxu1  ;;  %584 = vmax.xlane.f32.xlu0 %v583_v41 }
 0x400   :  { %v2356_v50 = vadd.f32 %v540_v45, %v114_v47 }
 0x401   :  { %v598_v49 = vsel %vm142_vm0, %v2346_v42, -inf }
 0x402   :  { %599 = vmax.xlane.f32.xlu1 %v598_v49  ;;  %v1676_v54 = vpop.f32.mrb[14].mxu1  ;;  %v595_v9 = vsel %vm142_vm0, %v2356_v50, -inf }
 0x403   :  { %v2360_v60 = vadd.f32 %v1676_v54, %v117_v48  ;;  %v550_v63 = vpop.f32.mrb[15].mxu1  ;;  %590 = vmax.xlane.f32.xlu0 %v589_v55 }
 0x404   :  { %v2367_v8 = vadd.f32 %v550_v63, %v116_v0 }
 0x405   :  { %v604_v3 = vsel %vm142_vm0, %v2360_v60, -inf }
 0x406   :  { %605 = vmax.xlane.f32.xlu1 %v604_v3  ;;  %v601_v13 = vsel %vm142_vm0, %v2367_v8, -inf }
 0x407   :  { %596 = vmax.xlane.f32.xlu0 %v595_v9 }
 0x40b   :  { %602 = vmax.xlane.f32.xlu0 %v601_v13 }
 0x477   :  { %v564_v17 = vpop.xlane.xlu1 %563 }
 0x478   :  { %v608_v19 = vsub.f32 %v2267_v28, %v564_v17  ;;  %v561_v22 = vpop.xlane.xlu0 %560 }
 0x479   :  { %v607_v25 = vsub.f32 %v2269_v30, %v561_v22 }
 0x47a   :  { %v625_v26 = vmul.f32 1.442695, %v608_v19 }
 0x47b   :  { %v623_v32 = vmul.f32 1.442695, %v607_v25 }
 0x47c   :  { %1887 = vpow2.f32 %v625_v26  ;;  %v570_v33 = vpop.xlane.xlu0 %569 }
 0x47d   :  { %1889 = vpow2.f32 %v623_v32  ;;  %v610_v34 = vsub.f32 %v2278_v37, %v570_v33 }
 0x47f   :  { %v629_v35 = vmul.f32 1.442695, %v610_v34  ;;  %v576_v40 = vpop.xlane.xlu1 %575 }
 0x480   :  { %v612_v41 = vsub.f32 %v2290_v46, %v576_v40  ;;  %v567_v45 = vpop.xlane.xlu0 %566 }
 0x481   :  { %1891 = vpow2.f32 %v629_v35  ;;  %v609_v47 = vsub.f32 %v2288_v44, %v567_v45 }
 0x482   :  { %v633_v48 = vmul.f32 1.442695, %v612_v41 }
 0x483   :  { %v627_v28 = vmul.f32 1.442695, %v609_v47  ;;  %v582_v49 = vpop.xlane.xlu1 %581 }
 0x484   :  { %1893 = vpow2.f32 %v633_v48  ;;  %v614_v30 = vsub.f32 %v2304_v59, %v582_v49  ;;  %v573_v54 = vpop.xlane.xlu0 %572 }
 0x485   :  { %1895 = vpow2.f32 %v627_v28  ;;  %v611_v55 = vsub.f32 %v2300_v51, %v573_v54 }
 0x486   :  { %v2380_v63 = vpop.eup %1887  ;;  %v637_v37 = vmul.f32 1.442695, %v614_v30 }
 0x487   :  { %v2382_v0 = vpop.eup %1889  ;;  %v631_v46 = vmul.f32 1.442695, %v611_v55  ;;  %v588_v3 = vpop.xlane.xlu1 %587  ;;  %v658_v44 = vsel %vm142_vm0, %v2380_v63, 0.0 }
 0x488   :  { %1897 = vpow2.f32 %v637_v37  ;;  %v616_v9 = vsub.f32 %v2318_v12, %v588_v3  ;;  %659 = vadd.xlane.f32.xlu1 %v658_v44  ;;  %v579_v13 = vpop.xlane.xlu0 %578  ;;  %v655_v59 = vsel %vm142_vm0, %v2382_v0, 0.0 }
 0x489   :  { %1899 = vpow2.f32 %v631_v46  ;;  %v613_v51 = vsub.f32 %v2314_v4, %v579_v13  ;;  %656 = vadd.xlane.f32.xlu0 %v655_v59 }
 0x48a   :  { %v641_v17 = vmul.f32 1.442695, %v616_v9 }
 0x48b   :  { %v2390_v19 = vpop.eup %1891  ;;  %v635_v22 = vmul.f32 1.442695, %v613_v51  ;;  %v594_v25 = vpop.xlane.xlu1 %593 }
 0x48c   :  { %1901 = vpow2.f32 %v641_v17  ;;  %v618_v26 = vsub.f32 %v2332_v29, %v594_v25  ;;  %v585_v32 = vpop.xlane.xlu0 %584  ;;  %v664_v12 = vsel %vm142_vm0, %v2390_v19, 0.0 }
 0x48d   :  { %1903 = vpow2.f32 %v635_v22  ;;  %v615_v33 = vsub.f32 %v2328_v24, %v585_v32  ;;  %665 = vadd.xlane.f32.xlu1 %v664_v12 }
 0x48e   :  { %v2396_v34 = vpop.eup %1893  ;;  %v645_v4 = vmul.f32 1.442695, %v618_v26 }
 0x48f   :  { %v2398_v35 = vpop.eup %1895  ;;  %v639_v40 = vmul.f32 1.442695, %v615_v33  ;;  %v670_v41 = vsel %vm142_vm0, %v2396_v34, 0.0  ;;  %v600_v17 = vpop.xlane.xlu1 %599 }
 0x490   :  { %1905 = vpow2.f32 %v645_v4  ;;  %v591_v45 = vpop.xlane.xlu0 %590  ;;  %v661_v29 = vsel %vm142_vm0, %v2398_v35, 0.0  ;;  %v620_v26 = vsub.f32 %v2346_v42, %v600_v17 }
 0x491   :  { %1907 = vpow2.f32 %v639_v40  ;;  %v617_v47 = vsub.f32 %v2342_v38, %v591_v45  ;;  %671 = vadd.xlane.f32.xlu1 %v670_v41  ;;  %662 = vadd.xlane.f32.xlu0 %v661_v29 }
 0x492   :  { %v2405_v24 = vpop.eup %1897  ;;  %v649_v4 = vmul.f32 1.442695, %v620_v26 }
 0x493   :  { %v2407_v48 = vpop.eup %1899  ;;  %v643_v28 = vmul.f32 1.442695, %v617_v47  ;;  %v676_v49 = vsel %vm142_vm0, %v2405_v24, 0.0  ;;  %v606_v33 = vpop.xlane.xlu1 %605 }
 0x494   :  { %v667_v30 = vsel %vm142_vm0, %v2407_v48, 0.0  ;;  %v597_v51 = vpop.xlane.xlu0 %596  ;;  %v622_v40 = vsub.f32 %v2360_v60, %v606_v33 }
 0x495   :  { %1909 = vpow2.f32 %v643_v28  ;;  %677 = vadd.xlane.f32.xlu1 %v676_v49  ;;  %668 = vadd.xlane.f32.xlu0 %v667_v30  ;;  %v619_v22 = vsub.f32 %v2356_v50, %v597_v51 }
 0x496   :  { %v2413_v54 = vpop.eup %1901 }
 0x497   :  { %v2415_v55 = vpop.eup %1903  ;;  %v682_v38 = vsel %vm142_vm0, %v2413_v54, 0.0  ;;  %v647_v32 = vmul.f32 1.442695, %v619_v22 }
 0x498   :  { %v673_v37 = vsel %vm142_vm0, %v2415_v55, 0.0  ;;  %v603_v25 = vpop.xlane.xlu0 %602 }
 0x499   :  { %683 = vadd.xlane.f32.xlu1 %v682_v38  ;;  %674 = vadd.xlane.f32.xlu0 %v673_v37  ;;  %v621_v12 = vsub.f32 %v2367_v8, %v603_v25  ;;  %1911 = vpow2.f32 %v647_v32 }
 0x49a   :  { %v2421_v46 = vpop.eup %1905  ;;  %1913 = vpow2.f32 %v649_v4 }
 0x49b   :  { %v2423_v3 = vpop.eup %1907  ;;  %v688_v44 = vsel %vm142_vm0, %v2421_v46, 0.0  ;;  %v651_v41 = vmul.f32 1.442695, %v621_v12 }
 0x49c   :  { %v679_v9 = vsel %vm142_vm0, %v2423_v3, 0.0 }
 0x49d   :  { %689 = vadd.xlane.f32.xlu1 %v688_v44  ;;  %680 = vadd.xlane.f32.xlu0 %v679_v9  ;;  %1915 = vpow2.f32 %v651_v41 }
 0x49f   :  { %v2429_v13 = vpop.eup %1909 }
 0x4a0   :  { %v685_v59 = vsel %vm142_vm0, %v2429_v13, 0.0 }
 0x4a1   :  { %686 = vadd.xlane.f32.xlu1 %v685_v59 }
 0x4b2   :  { %1873 = vrot.lane.b32.xlu1 %v2151_v43, %s1981_s29  ;;  %v653_v43 = vmul.f32 1.442695, %v622_v40 }
 0x4b3   :  { %1868 = vrot.lane.b32.xlu0 %v2146_v39, %s1981_s29  ;;  %v2439_v39 = vpop.eup %1911 }
 0x4b4   :  { %1917 = vpow2.f32 %v653_v43  ;;  %v2441_v45 = vpop.eup %1913  ;;  %v691_v42 = vsel %vm142_vm0, %v2439_v39, 0.0 }
 0x4b5   :  { %v2445_v50 = vpop.eup %1915  ;;  %v694_v8 = vsel %vm142_vm0, %v2441_v45, 0.0 }
 0x4b6   :  { %v697_v60 = vsel %vm142_vm0, %v2445_v50, 0.0 }
 0x4be   :  { %v2451_v29 = vpop.eup %1917 }
 0x4bf   :  { %v700_v47 = vsel %vm142_vm0, %v2451_v29, 0.0 }
 0x4d2   :  { %692 = vadd.xlane.f32.xlu0 %v691_v42 }
 0x4d6   :  { %695 = vadd.xlane.f32.xlu1 %v694_v8  ;;  %698 = vadd.xlane.f32.xlu0 %v697_v60 }
 0x4da   :  { %701 = vadd.xlane.f32.xlu0 %v700_v47 }
 0x515   :  { %v660_v28 = vpop.xlane.xlu1 %659 }
 0x516   :  { %v657_v49 = vpop.xlane.xlu0 %656 }
 0x517   :  { %1919 = vrcp.f32 %v657_v49 }
 0x518   :  { %1921 = vrcp.f32 %v660_v28 }
 0x51a   :  { %v666_v30 = vpop.xlane.xlu1 %665 }
 0x51e   :  { %v672_v38 = vpop.xlane.xlu1 %671  ;;  %v663_v37 = vpop.xlane.xlu0 %662 }
 0x51f   :  { %1923 = vrcp.f32 %v663_v37 }
 0x520   :  { %1925 = vrcp.f32 %v666_v30 }
 0x521   :  { %v1920_v44 = vpop.eup %1919 }
 0x522   :  { %v678_v9 = vpop.xlane.xlu1 %677  ;;  %v669_v59 = vpop.xlane.xlu0 %668  ;;  %v719_v51 = vmul.f32 %v1920_v44, %v2382_v0 }
 0x523   :  { %1927 = vrcp.f32 %v669_v59  ;;  %v1922_v8 = vpop.eup %1921 }
 0x524   :  { %1685 = vmatprep.mubr.msk.f32.mxu0 %vm142_vm0, %v719_v51  ;;  %1929 = vrcp.f32 %v672_v38  ;;  %v720_v47 = vmul.f32 %v1922_v8, %v2380_v63  ;;  %v74_v8 = vld [vmem:[%s2831_s2 + $0x120] sm:$0xff] }
 0x526   :  { %v684_v17 = vpop.xlane.xlu1 %683  ;;  %v675_v22 = vpop.xlane.xlu0 %674 }
 0x527   :  { %1931 = vrcp.f32 %v675_v22 }
 0x528   :  { %1933 = vrcp.f32 %v678_v9 }
 0x529   :  { %v1924_v60 = vpop.eup %1923 }
 0x52a   :  { %v690_v25 = vpop.xlane.xlu1 %689  ;;  %v681_v26 = vpop.xlane.xlu0 %680  ;;  %v721_v49 = vmul.f32 %v1924_v60, %v2398_v35  ;;  %v75_v60 = vld [vmem:[%s2831_s2 + $0x128] sm:$0xff] }
 0x52b   :  { %1935 = vrcp.f32 %v681_v26  ;;  %v1926_v28 = vpop.eup %1925 }
 0x52c   :  { %1937 = vrcp.f32 %v684_v17  ;;  %v722_v38 = vmul.f32 %v1926_v28, %v2390_v19  ;;  %v76_v28 = vld [vmem:[%s2831_s2 + $0x130] sm:$0xff] }
 0x52d   :  { %v1928_v30 = vpop.eup %1927 }
 0x52e   :  { %v687_v32 = vpop.xlane.xlu1 %686  ;;  %v1869_v12 = vpop.permute.xlu0 %1868  ;;  %v723_v44 = vmul.f32 %v1928_v30, %v2407_v48 }
 0x52f   :  { %v1871_v33 = vunpack.i.h.bf16 %v1869_v12  ;;  %v1870_v4 = vunpack.i.l.bf16 %v1869_v12  ;;  %1939 = vrcp.f32 %v687_v32  ;;  %v1930_v37 = vpop.eup %1929 }
 0x530   :  { %1941 = vrcp.f32 %v690_v25  ;;  %v724_v63 = vmul.f32 %v1930_v37, %v2396_v34 }
 0x531   :  { %v1781_v40 = vpack.c.bf16 %v1871_v33, %v1870_v4  ;;  %v1932_v9 = vpop.eup %1931 }
 0x532   :  { %v1874_v41 = vpop.permute.xlu1 %1873  ;;  %v1934_v35 = vpop.eup %1933  ;;  %v725_v59 = vmul.f32 %v1932_v9, %v2415_v55 }
 0x533   :  { %v1876_v43 = vunpack.i.h.bf16 %v1874_v41  ;;  %v1875_v42 = vunpack.i.l.bf16 %v1874_v41  ;;  %1782 = vmatprep.subr.bf16.mxu0 %v1781_v40  ;;  %v726_v19 = vmul.f32 %v1934_v35, %v2405_v24 }
 0x534   :  { %1784 = vmatpush3.bf16.msra.mxu0 %v1781_v40 }
 0x535   :  { %v1785_v0 = vpack.c.bf16 %v1876_v43, %v1875_v42  ;;  %v1936_v51 = vpop.eup %1935  ;;  %v71_v42 = vld [vmem:[%s2831_s2 + $0x108] sm:$0xff] }
 0x536   :  { %v1938_v17 = vpop.eup %1937  ;;  %v727_v48 = vmul.f32 %v1936_v51, %v2423_v3 }
 0x537   :  { %1786 = vmatprep.subr.bf16.mxu0 %v1785_v0  ;;  %v728_v34 = vmul.f32 %v1938_v17, %v2413_v54 }
 0x538   :  { %1788 = vmatpush3.bf16.msra.mxu0 %v1785_v0  ;;  %v73_v0 = vld [vmem:[%s2831_s2 + $0x118] sm:$0xff] }
 0x539   :  { %v1940_v22 = vpop.eup %1939 }
 0x53a   :  { %v1942_v25 = vpop.eup %1941  ;;  %v729_v55 = vmul.f32 %v1940_v22, %v2429_v13 }
 0x53b   :  { %1686 = vmatmul.mubr.msk.f32.vlgmr.msra.gmra.mrb[4].mxu0 %vm142_vm0, %v720_v47  ;;  %v730_v26 = vmul.f32 %v1942_v25, %v2421_v46  ;;  %v1797_v47 = vpack.c.bf16 %v75_v60, %v74_v8 }
 0x53c   :  { %1688 = vmatprep.mubr.msk.f32.mxu0 %vm142_vm0, %v721_v49  ;;  %v77_v49 = vld [vmem:[%s2831_s2 + $0x138] sm:$0xff] }
 0x53d   :  { %v1801_v30 = vpack.c.bf16 %v77_v49, %v76_v28  ;;  %v95_v49 = vld [vmem:[%s2831_s2 + $0x1c8] sm:$0xff] }
 0x53f   :  { %1689 = vmatmul.mubr.msk.f32.gmra.mrb[6].mxu0 %vm142_vm0, %v722_v38 }
 0x540   :  { %1691 = vmatprep.mubr.msk.f32.mxu0 %vm142_vm0, %v723_v44 }
 0x543   :  { %1692 = vmatmul.mubr.msk.f32.gmra.mrb[8].mxu0 %vm142_vm0, %v724_v63 }
 0x544   :  { %1694 = vmatprep.mubr.msk.f32.mxu0 %vm142_vm0, %v725_v59 }
 0x547   :  { %1695 = vmatmul.mubr.msk.f32.gmra.mrb[10].mxu0 %vm142_vm0, %v726_v19 }
 0x548   :  { %1697 = vmatprep.mubr.msk.f32.mxu0 %vm142_vm0, %v727_v48 }
 0x54b   :  { %1698 = vmatmul.mubr.msk.f32.gmra.mrb[12].mxu0 %vm142_vm0, %v728_v34 }
 0x54c   :  { %1700 = vmatprep.mubr.msk.f32.mxu0 %vm142_vm0, %v729_v55 }
 0x54f   :  { %1701 = vmatmul.mubr.msk.f32.gmra.mrb[14].mxu0 %vm142_vm0, %v730_v26 }
 0x55f   :  { %v693_v24 = vpop.xlane.xlu0 %692 }
 0x560   :  { %1943 = vrcp.f32 %v693_v24 }
 0x563   :  { %v696_v3 = vpop.xlane.xlu1 %695  ;;  %v699_v32 = vpop.xlane.xlu0 %698 }
 0x564   :  { %1945 = vrcp.f32 %v696_v3 }
 0x565   :  { %1947 = vrcp.f32 %v699_v32 }
 0x567   :  { %v702_v12 = vpop.xlane.xlu0 %701 }
 0x568   :  { %1949 = vrcp.f32 %v702_v12 }
 0x56a   :  { %v1944_v54 = vpop.eup %1943 }
 0x56b   :  { %v731_v33 = vmul.f32 %v1944_v54, %v2439_v39  ;;  %v70_v39 = vld [vmem:[%s2831_s2 + $0x100] sm:$0xff] }
 0x56d   :  { %1703 = vmatprep.mubr.msk.f32.mxu0 %vm142_vm0, %v731_v33 }
 0x56e   :  { %v1946_v13 = vpop.eup %1945 }
 0x56f   :  { %v1948_v4 = vpop.eup %1947  ;;  %v732_v40 = vmul.f32 %v1946_v13, %v2441_v45  ;;  %v72_v45 = vld [vmem:[%s2831_s2 + $0x110] sm:$0xff] }
 0x570   :  { %v733_v46 = vmul.f32 %v1948_v4, %v2445_v50  ;;  %v1789_v50 = vpack.c.bf16 %v71_v42, %v70_v39 }
 0x571   :  { %1704 = vmatmul.mubr.msk.f32.gmra.mrb[16].mxu0 %vm142_vm0, %v732_v40 }
 0x572   :  { %v1950_v41 = vpop.eup %1949  ;;  %1706 = vmatprep.mubr.msk.f32.mxu0 %vm142_vm0, %v733_v46  ;;  %1790 = vmatprep.subr.bf16.mxu0 %v1789_v50 }
 0x573   :  { %v734_v43 = vmul.f32 %v1950_v41, %v2451_v29  ;;  %v1793_v29 = vpack.c.bf16 %v73_v0, %v72_v45  ;;  %1792 = vmatpush3.bf16.msra.mxu0 %v1789_v50 }
 0x575   :  { %1707 = vmatmul.mubr.msk.f32.gmra.mrb[18].mxu0 %vm142_vm0, %v734_v43  ;;  %1794 = vmatprep.subr.bf16.mxu0 %v1793_v29 }
 0x577   :  { %1796 = vmatpush3.bf16.msra.mxu0 %v1793_v29 }
 0x578   :  { %1798 = vmatprep.subr.bf16.mxu0 %v1797_v47 }
 0x57b   :  { %1800 = vmatpush3.bf16.msra.mxu0 %v1797_v47 }
 0x57c   :  { %1802 = vmatprep.subr.bf16.mxu0 %v1801_v30 }
 0x57f   :  { %1804 = vmatpush3.bf16.msra.mxu0 %v1801_v30 }
 0x60e   :  { %v1687_v38 = vpop.f32.mrb[4].mxu0 }
 0x60f   :  { %v861_v37 = vpop.f32.mrb[5].mxu0  ;;  %v941_v35 = vmul.f32 %v1687_v38, %v2159_v52 }
 0x610   :  { %v940_v19 = vmul.f32 %v861_v37, %v2144_v36  ;;  %v94_v37 = vld [vmem:[%s2831_s2 + $0x1c0] sm:$0xff] }
 0x612   :  { %v1690_v44 = vpop.f32.mrb[6].mxu0 }
 0x613   :  { %v871_v9 = vpop.f32.mrb[7].mxu0  ;;  %v943_v25 = vmul.f32 %v1690_v44, %v2171_v56  ;;  %v1968_v44 = vld [vmem:[%s2829_s0] sm:$0xff] }
 0x614   :  { %v942_v24 = vmul.f32 %v871_v9, %v2164_v53 }
 0x616   :  { %v1693_v63 = vpop.f32.mrb[8].mxu0 }
 0x617   :  { %v945_v59 = vmul.f32 %v1693_v63, %v2185_v61  ;;  %v881_v51 = vpop.f32.mrb[9].mxu0 }
 0x618   :  { %v944_v17 = vmul.f32 %v881_v51, %v2177_v57 }
 0x619   :  { %v957_v48 = vadd.f32 %v945_v59, %v941_v35 }
 0x61a   :  { %v956_v22 = vadd.f32 %v944_v17, %v940_v19  ;;  %v1696_v34 = vpop.f32.mrb[10].mxu0  ;;  %v96_v17 = vld [vmem:[%s2831_s2 + $0x1d0] sm:$0xff] }
 0x61b   :  { %v947_v55 = vmul.f32 %v1696_v34, %v2199_v1  ;;  %v891_v26 = vpop.f32.mrb[11].mxu0 }
 0x61c   :  { %v946_v3 = vmul.f32 %v891_v26, %v2191_v62  ;;  %v97_v26 = vld [vmem:[%s2831_s2 + $0x1d8] sm:$0xff] }
 0x61d   :  { %v959_v52 = vadd.f32 %v947_v55, %v943_v25  ;;  %v1970_v25 = vld [vmem:[%s2829_s0 + $0x10] sm:$0xff] }
 0x61e   :  { %v958_v32 = vadd.f32 %v946_v3, %v942_v24  ;;  %v1699_v61 = vpop.f32.mrb[12].mxu0 }
 0x61f   :  { %v949_v12 = vmul.f32 %v1699_v61, %v2213_v6  ;;  %v901_v36 = vpop.f32.mrb[13].mxu0 }
 0x620   :  { %v948_v57 = vmul.f32 %v901_v36, %v2205_v2 }
 0x621   :  { %v961_v54 = vadd.f32 %v957_v48, %v949_v12 }
 0x622   :  { %v960_v33 = vadd.f32 %v956_v22, %v948_v57  ;;  %v1702_v13 = vpop.f32.mrb[14].mxu0  ;;  %v1969_v22 = vld [vmem:[%s2829_s0 + $0x18] sm:$0xff] }
 0x623   :  { %v951_v56 = vmul.f32 %v1702_v13, %v2227_v10  ;;  %v911_v4 = vpop.f32.mrb[15].mxu0 }
 0x624   :  { %v950_v1 = vmul.f32 %v911_v4, %v2219_v7 }
 0x625   :  { %v963_v40 = vadd.f32 %v959_v52, %v951_v56 }
 0x626   :  { %v962_v53 = vadd.f32 %v958_v32, %v950_v1 }
 0x644   :  { %v1705_v46 = vpop.f32.mrb[16].mxu0 }
 0x645   :  { %v953_v62 = vmul.f32 %v1705_v46, %v2241_v15  ;;  %v921_v41 = vpop.f32.mrb[17].mxu0 }
 0x646   :  { %v952_v43 = vmul.f32 %v921_v41, %v2233_v11 }
 0x647   :  { %v965_v6 = vadd.f32 %v961_v54, %v953_v62 }
 0x648   :  { %v964_v39 = vadd.f32 %v960_v33, %v952_v43  ;;  %v1708_v42 = vpop.f32.mrb[18].mxu0 }
 0x649   :  { %v955_v2 = vmul.f32 %v1708_v42, %v2255_v21  ;;  %v931_v45 = vpop.f32.mrb[19].mxu0  ;;  %v973_v50 = vmul.f32 %v965_v6, %v2080_v5 }
 0x64a   :  { %v954_v10 = vmul.f32 %v931_v45, %v2247_v16  ;;  %v972_v7 = vmul.f32 %v964_v39, %v2064_v58  ;;  %v968_v5 = vmul.f32 %v964_v39, %v2112_v20  ;;  %v969_v16 = vmul.f32 %v965_v6, %v2118_v23  ;;  %v26_v45 = vld [vmem:[%s2830_s1 + $0x40] sm:$0xff] }
 0x64b   :  { %v967_v0 = vadd.f32 %v963_v40, %v955_v2  ;;  %982 = vrot.lane.b32.xlu1 %v973_v50, %s1979_s27  ;;  %v27_v50 = vld [vmem:[%s2830_s1 + $0x48] sm:$0xff] }
 0x64c   :  { %v966_v29 = vadd.f32 %v962_v53, %v954_v10  ;;  %980 = vrot.lane.b32.xlu0 %v972_v7, %s1979_s27  ;;  %v28_v10 = vld [vmem:[%s2830_s1 + $0x50] sm:$0xff]  ;;  %v1805_v7 = vpack.c.bf16 %v27_v50, %v26_v45 }
 0x64d   :  { %v975_v15 = vmul.f32 %v967_v0, %v2104_v18  ;;  %v971_v20 = vmul.f32 %v967_v0, %v2134_v31  ;;  %v29_v0 = vld [vmem:[%s2830_s1 + $0x58] sm:$0xff] }
 0x64e   :  { %v974_v11 = vmul.f32 %v966_v29, %v2094_v14  ;;  %v970_v14 = vmul.f32 %v966_v29, %v2126_v27  ;;  %v1967_v27 = vld [vmem:[%s2829_s0 + $0x8] sm:$0xff]  ;;  %v1809_v29 = vpack.c.bf16 %v29_v0, %v28_v10  ;;  %1806 = vmatprep.subr.bf16.mxu0 %v1805_v7  ;;  %v1973_v0 = vld [vmem:[%s2831_s2 + $0x330] sm:$0xff] }
 0x650   :  { %984 = vrot.lane.b32.xlu1 %v974_v11, %s1979_s27  ;;  %v30_v11 = vld [vmem:[%s2830_s1 + $0x60] sm:$0xff] }
 0x654   :  { %986 = vrot.lane.b32.xlu1 %v975_v15, %s1979_s27  ;;  %v31_v15 = vld [vmem:[%s2830_s1 + $0x68] sm:$0xff] }
 0x6bd   :  { %v983_v21 = vpop.permute.xlu1 %982 }
 0x6be   :  { %v981_v58 = vpop.permute.xlu0 %980  ;;  %v993_v60 = vsel %vm142_vm0, %v969_v16, %v983_v21  ;;  %v32_v21 = vld [vmem:[%s2830_s1 + $0x70] sm:$0xff]  ;;  %v33_v16 = vld [vmem:[%s2830_s1 + $0x78] sm:$0xff] }
 0x6bf   :  { %v992_v8 = vsel %vm142_vm0, %v968_v5, %v981_v58  ;;  %v1813_v5 = vpack.c.bf16 %v31_v15, %v30_v11  ;;  %v1817_v58 = vpack.c.bf16 %v33_v16, %v32_v21  ;;  %v1976_v16 = vld [vmem:[%s2831_s2 + $0x310] sm:$0xff] }
 0x6c0   :  { %1725 = vmatprep.mubr.msk.f32.mxu0 %vm232_vm1, %v992_v8 }
 0x6c1   :  { %1726 = vmatmul.mubr.msk.f32.vlgmr.msra.gmra.mrb[20].mxu0 %vm232_vm1, %v993_v60 }
 0x6c2   :  { %v985_v47 = vpop.permute.xlu1 %984  ;;  %1808 = vmatpush3.bf16.msra.mxu0 %v1805_v7  ;;  %v93_v7 = vld [vmem:[%s2831_s2 + $0x1b8] sm:$0xff] }
 0x6c3   :  { %v994_v18 = vsel %vm142_vm0, %v970_v14, %v985_v47  ;;  %1810 = vmatprep.subr.bf16.mxu0 %v1809_v29 }
 0x6c4   :  { %1728 = vmatprep.mubr.msk.f32.mxu0 %vm232_vm1, %v994_v18 }
 0x6c6   :  { %v987_v28 = vpop.permute.xlu1 %986  ;;  %1812 = vmatpush3.bf16.msra.mxu0 %v1809_v29 }
 0x6c7   :  { %v995_v23 = vsel %vm142_vm0, %v971_v20, %v987_v28  ;;  %1814 = vmatprep.subr.bf16.mxu0 %v1813_v5 }
 0x6c8   :  { %1729 = vmatmul.mubr.msk.f32.gmra.mrb[22].mxu0 %vm232_vm1, %v995_v23 }
 0x6ca   :  { %1816 = vmatpush3.bf16.msra.mxu0 %v1813_v5  ;;  %v1975_v5 = vld [vmem:[%s2831_s2 + $0x338] sm:$0xff] }
 0x6cb   :  { %1818 = vmatprep.subr.bf16.mxu0 %v1817_v58 }
 0x6ce   :  { %1820 = vmatpush3.bf16.msra.mxu0 %v1817_v58  ;;  %v1977_v58 = vld [vmem:[%s2831_s2 + $0x300] sm:$0xff] }
 0x794   :  { %v1727_v30 = vpop.f32.mrb[20].mxu0 }
 0x795   :  { %v1094_v38 = vadd.f32 %v1967_v27, %v1727_v30  ;;  %v1074_v31 = vpop.f32.mrb[21].mxu0 }
 0x796   :  { %v1093_v9 = vadd.f32 %v1968_v44, %v1074_v31  ;;  %v87_v31 = vld [vmem:[%s2831_s2 + $0x188] sm:$0xff] }
 0x797   :  { %v2559_v63 = vadd.f32 %v1094_v38, %v95_v49 }
 0x798   :  { %v2561_v35 = vadd.f32 %v1093_v9, %v94_v37 }
 0x799   :  { %v1104_v59 = vsel %vm142_vm0, %v2559_v63, 0.0 }
 0x79a   :  { %1105 = vadd.xlane.f32.xlu1 %v1104_v59  ;;  %v1101_v51 = vsel %vm142_vm0, %v2561_v35, 0.0  ;;  %v86_v59 = vld [vmem:[%s2831_s2 + $0x180] sm:$0xff] }
 0x79b   :  { %1102 = vadd.xlane.f32.xlu0 %v1101_v51  ;;  %v1730_v19 = vpop.f32.mrb[22].mxu0  ;;  %v91_v51 = vld [vmem:[%s2831_s2 + $0x1a8] sm:$0xff] }
 0x79c   :  { %v1084_v48 = vpop.f32.mrb[23].mxu0  ;;  %v1096_v34 = vadd.f32 %v1969_v22, %v1730_v19 }
 0x79d   :  { %v1095_v55 = vadd.f32 %v1970_v25, %v1084_v48  ;;  %v90_v48 = vld [vmem:[%s2831_s2 + $0x1a0] sm:$0xff] }
 0x79e   :  { %v2581_v3 = vadd.f32 %v1096_v34, %v97_v26 }
 0x79f   :  { %v2579_v24 = vadd.f32 %v1095_v55, %v96_v17  ;;  %v1971_v55 = vld [vmem:[%s2831_s2 + $0x328] sm:$0xff] }
 0x7a0   :  { %v1110_v32 = vsel %vm142_vm0, %v2581_v3, 0.0 }
 0x7a1   :  { %v1107_v52 = vsel %vm142_vm0, %v2579_v24, 0.0 }
 0x7a2   :  { %1108 = vadd.xlane.f32.xlu0 %v1107_v52 }
 0x7a6   :  { %1111 = vadd.xlane.f32.xlu0 %v1110_v32  ;;  %v1972_v32 = vld [vmem:[%s2831_s2 + $0x320] sm:$0xff] }
 0x827   :  { %v1106_v61 = vpop.xlane.xlu1 %1105 }
 0x828   :  { %v1114_v12 = vmul.f32 0.03125, %v1106_v61  ;;  %v1103_v36 = vpop.xlane.xlu0 %1102 }
 0x829   :  { %v1113_v57 = vmul.f32 0.03125, %v1103_v36  ;;  %v92_v36 = vld [vmem:[%s2831_s2 + $0x1b0] sm:$0xff] }
 0x82a   :  { %v1118_v54 = vsub.f32 %v2559_v63, %v1114_v12  ;;  %v88_v12 = vld [vmem:[%s2831_s2 + $0x190] sm:$0xff] }
 0x82b   :  { %v1117_v33 = vsub.f32 %v2561_v35, %v1113_v57 }
 0x82c   :  { %v1122_v13 = vmul.f32 %v1118_v54, %v1118_v54 }
 0x82d   :  { %v1121_v56 = vmul.f32 %v1117_v33, %v1117_v33 }
 0x82e   :  { %v1128_v4 = vsel %vm142_vm0, %v1122_v13, 0.0  ;;  %v38_v13 = vld [vmem:[%s2831_s2] sm:$0xff] }
 0x82f   :  { %1129 = vadd.xlane.f32.xlu1 %v1128_v4  ;;  %v1109_v1 = vpop.xlane.xlu0 %1108  ;;  %v1125_v40 = vsel %vm142_vm0, %v1121_v56, 0.0  ;;  %v1982_v56 = vmov 0  }
 0x830   :  { %v1115_v53 = vmul.f32 0.03125, %v1109_v1  ;;  %1126 = vadd.xlane.f32.xlu0 %v1125_v40  ;;  %1878 = vset.pattern.permute.xlu1 %v1982_v56  ;;  %v39_v1 = vld [vmem:[%s2831_s2 + $0x8] sm:$0xff]  ;;  %v56_v40 = vld [vmem:[%s2831_s2 + $0x90] sm:$0xff] }
 0x831   :  { %1877 = vset.pattern.permute.xlu0 %v1982_v56  ;;  %v49_v56 = vld [vmem:[%s2831_s2 + $0x58] sm:$0xff] }
 0x832   :  { %v2592_v46 = vsub.f32 %v2579_v24, %v1115_v53  ;;  %v57_v53 = vld [vmem:[%s2831_s2 + $0x98] sm:$0xff] }
 0x833   :  { %v1112_v62 = vpop.xlane.xlu0 %1111 }
 0x834   :  { %v1116_v41 = vmul.f32 0.03125, %v1112_v62  ;;  %v1123_v43 = vmul.f32 %v2592_v46, %v2592_v46  ;;  %v1823_v62 = vpack.c.bf16 %v39_v1, %v38_v13  ;;  %v48_v13 = vld [vmem:[%s2831_s2 + $0x50] sm:$0xff]  ;;  %v66_v1 = vld [vmem:[%s2831_s2 + $0xe0] sm:$0xff] }
 0x836   :  { %v2597_v6 = vsub.f32 %v2581_v3, %v1116_v41  ;;  %v1131_v39 = vsel %vm142_vm0, %v1123_v43, 0.0  ;;  %v1825_v41 = vpack.c.bf16 %v57_v53, %v56_v40  ;;  %v40_v43 = vld [vmem:[%s2831_s2 + $0x10] sm:$0xff]  ;;  %v67_v40 = vld [vmem:[%s2831_s2 + $0xe8] sm:$0xff] }
 0x837   :  { %1132 = vadd.xlane.f32.xlu0 %v1131_v39  ;;  %v41_v39 = vld [vmem:[%s2831_s2 + $0x18] sm:$0xff]  ;;  %v1845_v53 = vpack.c.bf16 %v67_v40, %v66_v1 }
 0x838   :  { %v1124_v42 = vmul.f32 %v2597_v6, %v2597_v6  ;;  %v1827_v10 = vpack.c.bf16 %v41_v39, %v40_v43  ;;  %v68_v43 = vld [vmem:[%s2831_s2 + $0xf0] sm:$0xff]  ;;  %v69_v39 = vld [vmem:[%s2831_s2 + $0xf8] sm:$0xff] }
 0x83a   :  { %v1134_v2 = vsel %vm142_vm0, %v1124_v42, 0.0 }
 0x83b   :  { %1135 = vadd.xlane.f32.xlu1 %v1134_v2  ;;  %v89_v2 = vld [vmem:[%s2831_s2 + $0x198] sm:$0xff] }
 0x8bc   :  { %v1130_v8 = vpop.xlane.xlu1 %1129 }
 0x8bd   :  { %v1138_v60 = vmul.f32 0.03125, %v1130_v8  ;;  %v1127_v14 = vpop.xlane.xlu0 %1126  ;;  %v1978_v8 = vld [vmem:[%s2831_s2 + $0x318] sm:$0xff] }
 0x8be   :  { %v1137_v47 = vmul.f32 0.03125, %v1127_v14 }
 0x8bf   :  { %v1142_v18 = vadd.f32 1e-06, %v1138_v60 }
 0x8c0   :  { %v1141_v20 = vadd.f32 1e-06, %v1137_v47 }
 0x8c1   :  { %1951 = vrsqrt.f32 %v1142_v18 }
 0x8c2   :  { %1953 = vrsqrt.f32 %v1141_v20 }
 0x8c4   :  { %v1133_v28 = vpop.xlane.xlu0 %1132 }
 0x8c5   :  { %v1139_v23 = vmul.f32 0.03125, %v1133_v28 }
 0x8c7   :  { %v1143_v49 = vadd.f32 1e-06, %v1139_v23 }
 0x8c8   :  { %v1136_v30 = vpop.xlane.xlu1 %1135 }
 0x8c9   :  { %1955 = vrsqrt.f32 %v1143_v49  ;;  %v1140_v27 = vmul.f32 0.03125, %v1136_v30 }
 0x8cb   :  { %v1952_v38 = vpop.eup %1951  ;;  %v1144_v37 = vadd.f32 1e-06, %v1140_v27 }
 0x8cc   :  { %v1954_v44 = vpop.eup %1953  ;;  %v1150_v9 = vmul.f32 %v1952_v38, %v1118_v54  ;;  %v54_v54 = vld [vmem:[%s2831_s2 + $0x80] sm:$0xff] }
 0x8cd   :  { %1957 = vrsqrt.f32 %v1144_v37  ;;  %v1149_v19 = vmul.f32 %v1954_v44, %v1117_v33  ;;  %v55_v33 = vld [vmem:[%s2831_s2 + $0x88] sm:$0xff] }
 0x8ce   :  { %v1154_v17 = vmul.f32 %v1150_v9, %v87_v31  ;;  %v1821_v4 = vpack.c.bf16 %v55_v33, %v54_v54  ;;  %v58_v31 = vld [vmem:[%s2831_s2 + $0xa0] sm:$0xff]  ;;  %v59_v44 = vld [vmem:[%s2831_s2 + $0xa8] sm:$0xff]  ;;  %v65_v54 = vld [vmem:[%s2831_s2 + $0xd8] sm:$0xff] }
 0x8cf   :  { %v1153_v22 = vmul.f32 %v1149_v19, %v86_v59  ;;  %v1829_v9 = vpack.c.bf16 %v59_v44, %v58_v31  ;;  %v42_v59 = vld [vmem:[%s2831_s2 + $0x20] sm:$0xff] }
 0x8d0   :  { %v1158_v34 = vadd.f32 %v1154_v17, %v91_v51  ;;  %1822 = vmatprep.subr.bf16.mxu1 %v1821_v4  ;;  %v43_v51 = vld [vmem:[%s2831_s2 + $0x28] sm:$0xff]  ;;  %v60_v17 = vld [vmem:[%s2831_s2 + $0xb0] sm:$0xff]  ;;  %v1843_v4 = vpack.c.bf16 %v49_v56, %v48_v13 }
 0x8d1   :  { %v1157_v25 = vadd.f32 %v1153_v22, %v90_v48  ;;  %1824 = vmatpush3.bf16.msra.mxu1 %v1823_v62  ;;  %v1831_v19 = vpack.c.bf16 %v43_v51, %v42_v59  ;;  %v61_v48 = vld [vmem:[%s2831_s2 + $0xb8] sm:$0xff]  ;;  %v51_v62 = vld [vmem:[%s2831_s2 + $0x68] sm:$0xff] }
 0x8d2   :  { %v1166_v26 = vmul.f32 %v1971_v55, %v1158_v34  ;;  %1826 = vmatprep.subr.bf16.mxu1 %v1825_v41  ;;  %v1833_v22 = vpack.c.bf16 %v61_v48, %v60_v17 }
 0x8d3   :  { %v1956_v52 = vpop.eup %1955  ;;  %v1165_v61 = vmul.f32 %v1972_v32, %v1157_v25  ;;  %v1161_v14 = vmul.f32 %v1977_v58, %v1157_v25  ;;  %v45_v25 = vld [vmem:[%s2831_s2 + $0x38] sm:$0xff] }
 0x8d4   :  { %1175 = vrot.lane.b32.xlu1 %v1166_v26, %s1979_s27  ;;  %v1151_v57 = vmul.f32 %v1956_v52, %v2592_v46  ;;  %v62_v26 = vld [vmem:[%s2831_s2 + $0xc0] sm:$0xff]  ;;  %v63_v52 = vld [vmem:[%s2831_s2 + $0xc8] sm:$0xff] }
 0x8d5   :  { %1173 = vrot.lane.b32.xlu0 %v1165_v61, %s1979_s27  ;;  %1828 = vmatpush3.bf16.msra.mxu1 %v1827_v10  ;;  %v1837_v61 = vpack.c.bf16 %v63_v52, %v62_v26  ;;  %v35_v10 = vld [vmem:[%s2830_s1 + $0x88] sm:$0xff] }
 0x8d6   :  { %v1155_v46 = vmul.f32 %v1151_v57, %v88_v12  ;;  %1830 = vmatprep.subr.bf16.mxu1 %v1829_v9  ;;  %v47_v12 = vld [vmem:[%s2831_s2 + $0x48] sm:$0xff]  ;;  %v64_v57 = vld [vmem:[%s2831_s2 + $0xd0] sm:$0xff] }
 0x8d7   :  { %v1958_v42 = vpop.eup %1957  ;;  %v1841_v33 = vpack.c.bf16 %v65_v54, %v64_v57 }
 0x8d8   :  { %v1159_v45 = vadd.f32 %v1155_v46, %v92_v36  ;;  %v1152_v50 = vmul.f32 %v1958_v42, %v2597_v6  ;;  %v1974_v6 = vld [vmem:[%s2831_s2 + $0x308] sm:$0xff]  ;;  %v50_v46 = vld [vmem:[%s2831_s2 + $0x60] sm:$0xff]  ;;  %v1849_v42 = vpack.c.bf16 %v69_v39, %v68_v43 }
 0x8d9   :  { %1332 = vperm.xlu0 %1877, %v1972_v32   ;;  %v1162_v47 = vmul.f32 %v1974_v6, %v1158_v34  ;;  %1832 = vmatpush3.bf16.msra.mxu1 %v1831_v19  ;;  %v44_v34 = vld [vmem:[%s2831_s2 + $0x30] sm:$0xff]  ;;  %v46_v32 = vld [vmem:[%s2831_s2 + $0x40] sm:$0xff]  ;;  %v1847_v41 = vpack.c.bf16 %v51_v62, %v50_v46 }
 0x8da   :  { %v1167_v29 = vmul.f32 %v1973_v0, %v1159_v45  ;;  %v1156_v11 = vmul.f32 %v1152_v50, %v89_v2  ;;  %v1163_v23 = vmul.f32 %v1976_v16, %v1159_v45  ;;  %1834 = vmatprep.subr.bf16.mxu1 %v1833_v22  ;;  %v1839_v36 = vpack.c.bf16 %v47_v12, %v46_v32  ;;  %v52_v2 = vld [vmem:[%s2831_s2 + $0x70] sm:$0xff]  ;;  %v53_v45 = vld [vmem:[%s2831_s2 + $0x78] sm:$0xff]  ;;  %v98_v46 = vld [vmem:[%s2831_s2 + $0x1e0] sm:$0xff] }
 0x8db   :  { %v1851_v50 = vpack.c.bf16 %v53_v45, %v52_v2  ;;  %v99_v2 = vld [vmem:[%s2831_s2 + $0x1e8] sm:$0xff] }
 0x8dc   :  { %1177 = vrot.lane.b32.xlu1 %v1167_v29, %s1979_s27  ;;  %v1160_v15 = vadd.f32 %v1156_v11, %v93_v7  ;;  %v34_v7 = vld [vmem:[%s2830_s1 + $0x80] sm:$0xff] }
 0x8dd   :  { %1313 = vperm.xlu0 %1877, %v1974_v6  }
 0x8de   :  { %v1168_v21 = vmul.f32 %v1975_v5, %v1160_v15  ;;  %v1164_v27 = vmul.f32 %v1978_v8, %v1160_v15 }
 0x8e0   :  { %1179 = vrot.lane.b32.xlu1 %v1168_v21, %s1979_s27  ;;  %v37_v21 = vld [vmem:[%s2830_s1 + $0x98] sm:$0xff] }
 0x8e1   :  { %1318 = vperm.xlu0 %1877, %v1976_v16   ;;  %v36_v16 = vld [vmem:[%s2830_s1 + $0x90] sm:$0xff] }
 0x8e4   :  { %1308 = vperm.xlu1 %1878, %v1977_v58  }
 0x8e5   :  { %1323 = vperm.xlu0 %1877, %v1978_v8  }
 0x8e8   :  { %1337 = vperm.xlu1 %1878, %v1971_v55   ;;  %v1835_v55 = vpack.c.bf16 %v45_v25, %v44_v34 }
 0x8ea   :  { %1836 = vmatpush3.bf16.msra.mxu1 %v1835_v55 }
 0x8eb   :  { %1838 = vmatprep.subr.bf16.mxu1 %v1837_v61 }
 0x8ec   :  { %1342 = vperm.xlu1 %1878, %v1973_v0  }
 0x8ee   :  { %1840 = vmatpush3.bf16.msra.mxu1 %v1839_v36 }
 0x8ef   :  { %1842 = vmatprep.subr.bf16.mxu1 %v1841_v33 }
 0x8f0   :  { %1347 = vperm.xlu1 %1878, %v1975_v5  }
 0x8f2   :  { %1844 = vmatpush3.bf16.msra.mxu1 %v1843_v4 }
 0x8f3   :  { %1846 = vmatprep.subr.bf16.mxu1 %v1845_v53 }
 0x8f6   :  { %1848 = vmatpush3.bf16.msra.mxu1 %v1847_v41 }
 0x8f7   :  { %1850 = vmatprep.subr.bf16.mxu1 %v1849_v42 }
 0x8fa   :  { %1852 = vmatpush3.bf16.msra.mxu1 %v1851_v50 }
 0x946   :  { %v1176_v60 = vpop.permute.xlu1 %1175 }
 0x947   :  { %v1174_v18 = vpop.permute.xlu0 %1173  ;;  %v1186_v28 = vsel %vm142_vm0, %v1162_v47, %v1176_v60 }
 0x948   :  { %v1185_v20 = vsel %vm142_vm0, %v1161_v14, %v1174_v18 }
 0x949   :  { %1747 = vmatprep.mubr.msk.f32.mxu0 %vm232_vm1, %v1185_v20 }
 0x94a   :  { %1748 = vmatmul.mubr.msk.f32.vlgmr.msra.gmra.mrb[24].mxu0 %vm232_vm1, %v1186_v28 }
 0x94e   :  { %v1178_v49 = vpop.permute.xlu1 %1177 }
 0x94f   :  { %v1187_v30 = vsel %vm142_vm0, %v1163_v23, %v1178_v49 }
 0x950   :  { %1750 = vmatprep.mubr.msk.f32.mxu0 %vm232_vm1, %v1187_v30 }
 0x952   :  { %v1180_v38 = vpop.permute.xlu1 %1179 }
 0x953   :  { %v1188_v37 = vsel %vm142_vm0, %v1164_v27, %v1180_v38 }
 0x954   :  { %1751 = vmatmul.mubr.msk.f32.gmra.mrb[26].mxu0 %vm232_vm1, %v1188_v37 }
 0x958   :  { %v1333_v37 = vpop.permute.xlu0 %1332 }
 0x95c   :  { %v1314_v17 = vpop.permute.xlu0 %1313 }
 0x960   :  { %v1319_v12 = vpop.permute.xlu0 %1318 }
 0x963   :  { %v1309_v18 = vpop.permute.xlu1 %1308 }
 0x964   :  { %v1324_v56 = vpop.permute.xlu0 %1323 }
 0x967   :  { %v1338_v9 = vpop.permute.xlu1 %1337 }
 0x96b   :  { %v1343_v25 = vpop.permute.xlu1 %1342 }
 0x96f   :  { %v1348_v33 = vpop.permute.xlu1 %1347 }
 0xa1d   :  { %v1749_v0 = vpop.f32.mrb[24].mxu0 }
 0xa1e   :  { %v1273_v29 = vadd.f32 %v1749_v0, %v35_v10  ;;  %v1267_v11 = vpop.f32.mrb[25].mxu0  ;;  %v100_v0 = vld [vmem:[%s2831_s2 + $0x1f0] sm:$0xff] }
 0xa1f   :  { %v1268_v15 = vadd.f32 %v1267_v11, %v34_v7 }
 0xa20   :  { %v1291_v6 = vmul.f32 0.70710677, %v1273_v29  ;;  %v1287_v30 = vmul.f32 0.5, %v1273_v29 }
 0xa21   :  { %v1290_v5 = vmul.f32 0.70710677, %v1268_v15  ;;  %v1286_v27 = vmul.f32 0.5, %v1268_v15 }
 0xa22   :  { %1959 = verf.f32 %v1291_v6 }
 0xa23   :  { %1961 = verf.f32 %v1290_v5 }
 0xa27   :  { %v1752_v58 = vpop.f32.mrb[26].mxu0 }
 0xa28   :  { %v1283_v8 = vadd.f32 %v1752_v58, %v37_v21  ;;  %v1277_v60 = vpop.f32.mrb[27].mxu0 }
 0xa29   :  { %v1278_v14 = vadd.f32 %v1277_v60, %v36_v16 }
 0xa2a   :  { %v1293_v47 = vmul.f32 0.70710677, %v1283_v8  ;;  %v1289_v26 = vmul.f32 0.5, %v1283_v8 }
 0xa2b   :  { %v1292_v20 = vmul.f32 0.70710677, %v1278_v14  ;;  %v1288_v52 = vmul.f32 0.5, %v1278_v14 }
 0xa2c   :  { %v1960_v28 = vpop.eup %1959  ;;  %1963 = verf.f32 %v1293_v47 }
 0xa2d   :  { %v1962_v23 = vpop.eup %1961  ;;  %1965 = verf.f32 %v1292_v20  ;;  %v1299_v49 = vadd.f32 1.0, %v1960_v28 }
 0xa2e   :  { %v1298_v38 = vadd.f32 1.0, %v1962_v23 }
 0xa2f   :  { %v1303_v44 = vmul.f32 %v1299_v49, %v1287_v30 }
 0xa30   :  { %v1302_v31 = vmul.f32 %v1298_v38, %v1286_v27 }
 0xa31   :  { %v1351_v19 = vmul.f32 %v1338_v9, %v1303_v44  ;;  %v1327_v34 = vmul.f32 %v1314_v17, %v1303_v44 }
 0xa32   :  { %v1326_v59 = vmul.f32 %v1309_v18, %v1302_v31  ;;  %v1350_v51 = vmul.f32 %v1333_v37, %v1302_v31 }
 0xa34   :  { %1418 = vmatprep.mubr.f32.mxu1 %v1350_v51 }
 0xa35   :  { %1419 = vmatmul.mubr.f32.vlgmr.msra.gmra.mrb[16].mxu1 %v1326_v59 }
 0xa36   :  { %v1964_v48 = vpop.eup %1963  ;;  %1423 = vmatprep.mubr.f32.mxu1 %v1351_v19 }
 0xa37   :  { %v1966_v22 = vpop.eup %1965  ;;  %v1301_v55 = vadd.f32 1.0, %v1964_v48 }
 0xa38   :  { %v1300_v32 = vadd.f32 1.0, %v1966_v22 }
 0xa39   :  { %1424 = vmatmul.mubr.f32.gmra.mrb[18].mxu1 %v1327_v34  ;;  %v1305_v36 = vmul.f32 %v1301_v55, %v1289_v26 }
 0xa3a   :  { %v1304_v61 = vmul.f32 %v1300_v32, %v1288_v52 }
 0xa3b   :  { %v1353_v13 = vmul.f32 %v1348_v33, %v1305_v36  ;;  %v1329_v4 = vmul.f32 %v1324_v56, %v1305_v36 }
 0xa3c   :  { %v1352_v57 = vmul.f32 %v1343_v25, %v1304_v61  ;;  %v1328_v54 = vmul.f32 %v1319_v12, %v1304_v61 }
 0xa3e   :  { %1428 = vmatprep.mubr.f32.mxu1 %v1352_v57 }
 0xa3f   :  { %1429 = vmatmul.mubr.f32.gmra.mrb[20].mxu1 %v1328_v54 }
 0xa40   :  { %1433 = vmatprep.mubr.f32.mxu1 %v1353_v13 }
 0xa43   :  { %1434 = vmatmul.mubr.f32.gmra.mrb[22].mxu1 %v1329_v4 }
 0xb08   :  { %v1611_v1 = vpop.f32.mrb[16].mxu1 }
 0xb09   :  { %v1612_v40 = vpop.f32.mrb[17].mxu1 }
 0xb0a   :  { %v1613_v53 = vadd.f32 %v1612_v40, %v1611_v1 }
 0xb0c   :  { %v1439_v62 = vadd.f32 %v1613_v53, %v2561_v35  ;;  %v1614_v41 = vpop.f32.mrb[18].mxu1 }
 0xb0d   :  { %v1615_v43 = vpop.f32.mrb[19].mxu1 }
 0xb0e   :  { %v1443_v39 = vadd.f32 %v1439_v62, %v98_v46  ;;  %v1616_v42 = vadd.f32 %v1615_v43, %v1614_v41 }
 0xb10   :  { %1447 = vst.msk [vmem:[%s2832_s3] sm:$0xff] %vm142_vm0, %v1443_v39  ;;  %v1440_v45 = vadd.f32 %v1616_v42, %v2559_v63  ;;  %v101_v63 = vld [vmem:[%s2831_s2 + $0x1f8] sm:$0xff] }
 0xb12   :  { %v1444_v50 = vadd.f32 %v1440_v45, %v99_v2  ;;  %v1617_v10 = vpop.f32.mrb[20].mxu1 }
 0xb13   :  { %v1618_v7 = vpop.f32.mrb[21].mxu1 }
 0xb14   :  { %1448 = vst.msk [vmem:[%s2832_s3 + $0x8] sm:$0xff] %vm142_vm0, %v1444_v50  ;;  %v1619_v35 = vadd.f32 %v1618_v7, %v1617_v10 }
 0xb16   :  { %v1441_v29 = vadd.f32 %v1619_v35, %v2579_v24  ;;  %v1620_v11 = vpop.f32.mrb[22].mxu1 }
 0xb17   :  { %v1621_v15 = vpop.f32.mrb[23].mxu1 }
 0xb18   :  { %v1445_v6 = vadd.f32 %v1441_v29, %v100_v0  ;;  %v1622_v5 = vadd.f32 %v1621_v15, %v1620_v11 }
 0xb1a   :  { %1449 = vst.msk [vmem:[%s2832_s3 + $0x10] sm:$0xff] %vm142_vm0, %v1445_v6  ;;  %v1442_v21 = vadd.f32 %v1622_v5, %v2581_v3 }
 0xb1c   :  { %v1446_v16 = vadd.f32 %v1442_v21, %v101_v63 }
 0xb1e   :  { %1450 = vst.msk [vmem:[%s2832_s3 + $0x18] sm:$0xff] %vm142_vm0, %v1446_v16 }

</bundles_post_ra>
